<compile_context>
chip_gen: v6e
topology: v6e:2x2x1
jax: 0.10.0
libtpu: 0.0.40
codegen_flags: <defaults>
</compile_context>

<pallas_src>
import jax
import jax.numpy as jnp
from jax.experimental import pallas as pl


# ---------------------------------------------------------------------------
# Static problem geometry (toy shapes: batch=2, Cin=4, 16x16 input).
# ---------------------------------------------------------------------------
N_IMG = 2                 # batch
CIN = 4                   # input channels
HW = 16                   # input spatial size
C1 = 32                   # n_channel (conv1/conv2 output channels)
NCLS = 10                 # num_classes
K2 = 8                    # conv2 kernel size (spatial collapses to 1x1)

K1_RAW = 9 * CIN          # 36: conv1 im2col depth (3x3 taps x Cin)
K1 = 128                  # zero-padded K -> one full MXU pass, lane-dense LHS
N_POOL = HW // 2          # 8 pooled rows/cols
N_POS2 = K2 * K2          # 64 pooled positions == conv2 taps
GROUP = 8                 # conv2 positions fused per MXU matmul
N_GROUPS = N_POS2 // GROUP
ROWS1 = 4 * N_POS2 * N_IMG  # 512 conv1 rows, ordered w*128 + p*2 + n
                            # (w = 2x2 pool-window index, p = pooled position)


# ---------------------------------------------------------------------------
# Fused forward kernel: conv1 -> ReLU -> maxpool2x2 -> conv2 -> ReLU -> FC.
# ---------------------------------------------------------------------------
def _cifar_kernel(xcol_ref, w1_ref, b1_ref, w2g_ref, b2_ref,
                  fcw_ref, fcb_ref, out_ref):
    # ---- conv1 (3x3, pad=1): ONE lane-dense bf16 MXU matmul -----------------
    c1 = jnp.dot(xcol_ref[...], w1_ref[...],
                 preferred_element_type=jnp.float32)          # [512, 32] f32
    c1 = jnp.maximum(c1 + b1_ref[...], 0.0)

    # ---- 2x2 max-pool: rows are pool-window-major (w*128 + p*2 + n), so the
    #      pool is the elementwise max of four aligned 128-row value slices ----
    pooled = jnp.maximum(jnp.maximum(c1[0:128], c1[128:256]),
                         jnp.maximum(c1[256:384], c1[384:512]))   # [128, 32]
    pooled = pooled.astype(jnp.bfloat16)

    # ---- conv2 (8x8 valid -> 1x1): 8 grouped matmuls, lane-dense weights ----
    # Group g handles positions p = 8g..8g+7.  LHS = pooled rows 16g..16g+15
    # (row p*2 + n), RHS = [32, 256] with columns j*32 + co.  The useful
    # result is the 8 diagonal [2, 32] blocks y[2j:2j+2, 32j:32j+32].
    acc = None
    for g in range(N_GROUPS):
        y = jnp.dot(pooled[16 * g:16 * (g + 1)], w2g_ref[g],
                    preferred_element_type=jnp.float32)       # [16, 256] f32
        for j in range(GROUP):
            blk = y[2 * j:2 * j + 2, 32 * j:32 * (j + 1)]     # [2, 32]
            acc = blk if acc is None else acc + blk
    h = jnp.maximum(acc + b2_ref[...], 0.0)                   # [2, 32]

    # ---- classifier: Linear(n_channel -> num_classes) -----------------------
    out_ref[...] = (jnp.dot(h, fcw_ref[...], preferred_element_type=jnp.float32)
                    + fcb_ref[...]).astype(out_ref.dtype)


def _full_spec(shape):
    # Single whole-array block, resident in VMEM (all operands are tiny).
    return pl.BlockSpec(shape, lambda: (0,) * len(shape))


# ---------------------------------------------------------------------------
# One-time (init-time) weight re-layout.  Called OUTSIDE the per-call forward.
# ---------------------------------------------------------------------------
def prepare_params(params):
    # conv1: [Cout, Cin, 3, 3] -> [K1, Cout], row = (ki*3+kj)*Cin + ci, bf16.
    w1 = jnp.transpose(params["conv1_w"], (2, 3, 1, 0)).reshape(K1_RAW, C1)
    w1 = jnp.pad(w1, ((0, K1 - K1_RAW), (0, 0))).astype(jnp.bfloat16)

    # conv2: [Cout, Cin, 8, 8] -> per-position [p, ci, co] -> grouped lane-dense
    # slabs [N_GROUPS, 32, GROUP*32] with columns j*32 + co, bf16.
    w2 = jnp.transpose(params["conv2_w"], (2, 3, 1, 0)).reshape(N_POS2, C1, C1)
    w2 = (w2.reshape(N_GROUPS, GROUP, C1, C1)
            .transpose(0, 2, 1, 3)
            .reshape(N_GROUPS, C1, GROUP * C1)
            .astype(jnp.bfloat16))

    return {
        "w1": w1,
        "b1": params["conv1_b"].reshape(1, C1).astype(jnp.float32),
        "w2g": w2,
        "b2": params["conv2_b"].reshape(1, C1).astype(jnp.float32),
        "fcw": params["fc_w"].T.astype(jnp.float32),          # [32, 10]
        "fcb": params["fc_b"].reshape(1, NCLS).astype(jnp.float32),
    }


# ---------------------------------------------------------------------------
# Per-call activation glue: im2col for conv1 (~130 KB bf16), rows ordered
# pool-window-major so the in-kernel pool is 4 contiguous slices.
# ---------------------------------------------------------------------------
def _im2col_conv1(x):
    xp = jnp.pad(x, ((0, 0), (0, 0), (1, 1), (1, 1)))          # [2, 4, 18, 18]
    taps = [xp[:, :, ki:ki + HW, kj:kj + HW]
            for ki in range(3) for kj in range(3)]             # 9 x [2,4,16,16]
    pat = jnp.stack(taps, axis=2)                              # [n, ci, tap, i, j]
    pat = pat.reshape(N_IMG, CIN, 9, N_POOL, 2, N_POOL, 2)     # n ci tap io iw jo jw
    pat = jnp.transpose(pat, (4, 6, 3, 5, 0, 2, 1))            # iw jw io jo n tap ci
    xcol = pat.reshape(ROWS1, K1_RAW)                          # row = w*128 + p*2 + n
    xcol = jnp.pad(xcol, ((0, 0), (0, K1 - K1_RAW)))           # K zero-padded to 128
    return xcol.astype(jnp.bfloat16)


@jax.jit
def cifar_forward(x, prepped):
    assert x.shape == (N_IMG, CIN, HW, HW), x.shape
    xcol = _im2col_conv1(x)

    return pl.pallas_call(
        _cifar_kernel,
        out_shape=jax.ShapeDtypeStruct((N_IMG, NCLS), jnp.float32),
        in_specs=[
            _full_spec((ROWS1, K1)),                   # im2col activations (bf16)
            _full_spec((K1, C1)),                      # conv1 weight (bf16)
            _full_spec((1, C1)),                       # conv1 bias
            _full_spec((N_GROUPS, C1, GROUP * C1)),    # conv2 grouped weights (bf16)
            _full_spec((1, C1)),                       # conv2 bias
            _full_spec((C1, NCLS)),                    # fc weight (transposed)
            _full_spec((1, NCLS)),                     # fc bias
        ],
        out_specs=_full_spec((N_IMG, NCLS)),
    )(xcol, prepped["w1"], prepped["b1"], prepped["w2g"],
      prepped["b2"], prepped["fcw"], prepped["fcb"])


# ---------------------------------------------------------------------------
# Pure-JAX (f32) reference and parameter init.
# ---------------------------------------------------------------------------
def cifar_forward_ref(x, params):
    def conv(x, w, b, pad):
        return jax.lax.conv_general_dilated(
            x, w, window_strides=(1, 1),
            padding=((pad, pad), (pad, pad)),
            dimension_numbers=("NCHW", "OIHW", "NCHW"),
        ) + b.reshape(1, -1, 1, 1)

    x = jax.nn.relu(conv(x, params["conv1_w"], params["conv1_b"], 1))
    x = jax.lax.reduce_window(
        x, -jnp.inf, jax.lax.max, (1, 1, 2, 2), (1, 1, 2, 2), "VALID")
    x = jax.nn.relu(conv(x, params["conv2_w"], params["conv2_b"], 0))
    x = x.reshape(x.shape[0], -1)
    return x @ params["fc_w"].T + params["fc_b"]


def init_params(key, c_in=CIN, n_channel=C1, num_classes=NCLS, k2=K2):
    ks = jax.random.split(key, 6)
    s = 0.05
    return {
        "conv1_w": s * jax.random.normal(ks[0], (n_channel, c_in, 3, 3), jnp.float32),
        "conv1_b": s * jax.random.normal(ks[1], (n_channel,), jnp.float32),
        "conv2_w": s * jax.random.normal(ks[2], (n_channel, n_channel, k2, k2), jnp.float32),
        "conv2_b": s * jax.random.normal(ks[3], (n_channel,), jnp.float32),
        "fc_w": s * jax.random.normal(ks[4], (num_classes, n_channel), jnp.float32),
        "fc_b": s * jax.random.normal(ks[5], (num_classes,), jnp.float32),
    }


if __name__ == "__main__":
    key = jax.random.PRNGKey(0)
    k_x, k_p = jax.random.split(key)

    # Small shapes: batch=2, in-channels=4, spatial=16x16, n_channel=32, classes=10.
    x = jax.random.normal(k_x, (N_IMG, CIN, HW, HW), jnp.float32)
    params = init_params(k_p)

    # Weight re-layout done ONCE at init (hoisted out of the per-call forward).
    prepped = jax.tree_util.tree_map(jax.block_until_ready, prepare_params(params))

    out = jax.block_until_ready(cifar_forward(x, prepped))
    ref = jax.block_until_ready(cifar_forward_ref(x, params))

    assert out.shape == (N_IMG, NCLS), out.shape
    # Tolerance loosened vs the f32 reference because conv weights/activations
    # are fed to the MXU in bf16 (f32 accumulation).
    assert jnp.allclose(out, ref, atol=2e-2, rtol=2e-2), (
        float(jnp.max(jnp.abs(out - ref)))
    )
    print("KERNEL_OK")
</pallas_src>

<mosaic_0001>
module attributes {stable_mosaic.version = 11 : i64} {
  func.func @_cifar_kernel(%arg0: memref<512x128xbf16, #tpu.memory_space<vmem>>, %arg1: memref<128x32xbf16, #tpu.memory_space<vmem>>, %arg2: memref<1x32xf32, #tpu.memory_space<vmem>>, %arg3: memref<8x32x256xbf16, #tpu.memory_space<vmem>>, %arg4: memref<1x32xf32, #tpu.memory_space<vmem>>, %arg5: memref<32x10xf32, #tpu.memory_space<vmem>>, %arg6: memref<1x10xf32, #tpu.memory_space<vmem>>, %arg7: memref<2x10xf32, #tpu.memory_space<vmem>>) attributes {dimension_semantics = [], scalar_prefetch = 0 : i64, scratch_operands = 0 : i64, tpu.core_type = #tpu.core_type<tc>} {
    %c0 = arith.constant 0 : index
    %c0_0 = arith.constant 0 : index
    %0 = vector.load %arg0[%c0, %c0_0] : memref<512x128xbf16, #tpu.memory_space<vmem>>, vector<512x128xbf16>
    %c0_1 = arith.constant 0 : index
    %c0_2 = arith.constant 0 : index
    %1 = vector.load %arg1[%c0_1, %c0_2] : memref<128x32xbf16, #tpu.memory_space<vmem>>, vector<128x32xbf16>
    %cst = arith.constant dense<0.000000e+00> : vector<512x32xf32>
    %2 = tpu.matmul %0, %1, %cst {dimension_numbers = #tpu.dot_dimension_numbers<[1], [0], [0], [1], [0, 0, 1, 1], [], []>} : vector<512x128xbf16>, vector<128x32xbf16>, vector<512x32xf32> -> vector<512x32xf32>
    %c0_3 = arith.constant 0 : index
    %c0_4 = arith.constant 0 : index
    %3 = vector.load %arg2[%c0_3, %c0_4] : memref<1x32xf32, #tpu.memory_space<vmem>>, vector<1x32xf32>
    %4 = vector.broadcast %3 : vector<1x32xf32> to vector<512x32xf32>
    %5 = arith.addf %2, %4 : vector<512x32xf32>
    %cst_5 = arith.constant 0.000000e+00 : f32
    %6 = vector.broadcast %cst_5 : f32 to vector<512x32xf32>
    %7 = arith.maximumf %5, %6 : vector<512x32xf32>
    %8 = vector.extract_strided_slice %7 {offsets = [0, 0], sizes = [128, 32], strides = [1, 1]} : vector<512x32xf32> to vector<128x32xf32>
    %9 = vector.extract_strided_slice %7 {offsets = [128, 0], sizes = [128, 32], strides = [1, 1]} : vector<512x32xf32> to vector<128x32xf32>
    %10 = arith.maximumf %8, %9 : vector<128x32xf32>
    %11 = vector.extract_strided_slice %7 {offsets = [256, 0], sizes = [128, 32], strides = [1, 1]} : vector<512x32xf32> to vector<128x32xf32>
    %12 = vector.extract_strided_slice %7 {offsets = [384, 0], sizes = [128, 32], strides = [1, 1]} : vector<512x32xf32> to vector<128x32xf32>
    %13 = arith.maximumf %11, %12 : vector<128x32xf32>
    %14 = arith.maximumf %10, %13 : vector<128x32xf32>
    %15 = arith.truncf %14 : vector<128x32xf32> to vector<128x32xbf16>
    %16 = vector.extract_strided_slice %15 {offsets = [0, 0], sizes = [16, 32], strides = [1, 1]} : vector<128x32xbf16> to vector<16x32xbf16>
    %c0_6 = arith.constant 0 : index
    %c0_7 = arith.constant 0 : index
    %c0_8 = arith.constant 0 : index
    %17 = vector.load %arg3[%c0_6, %c0_7, %c0_8] : memref<8x32x256xbf16, #tpu.memory_space<vmem>>, vector<1x32x256xbf16>
    %18 = vector.shape_cast %17 : vector<1x32x256xbf16> to vector<32x256xbf16>
    %cst_9 = arith.constant dense<0.000000e+00> : vector<16x256xf32>
    %19 = tpu.matmul %16, %18, %cst_9 {dimension_numbers = #tpu.dot_dimension_numbers<[1], [0], [0], [1], [0, 0, 1, 1], [], []>} : vector<16x32xbf16>, vector<32x256xbf16>, vector<16x256xf32> -> vector<16x256xf32>
    %20 = vector.extract_strided_slice %19 {offsets = [0, 0], sizes = [2, 32], strides = [1, 1]} : vector<16x256xf32> to vector<2x32xf32>
    %21 = vector.extract_strided_slice %19 {offsets = [2, 32], sizes = [2, 32], strides = [1, 1]} : vector<16x256xf32> to vector<2x32xf32>
    %22 = arith.addf %20, %21 : vector<2x32xf32>
    %23 = vector.extract_strided_slice %19 {offsets = [4, 64], sizes = [2, 32], strides = [1, 1]} : vector<16x256xf32> to vector<2x32xf32>
    %24 = arith.addf %22, %23 : vector<2x32xf32>
    %25 = vector.extract_strided_slice %19 {offsets = [6, 96], sizes = [2, 32], strides = [1, 1]} : vector<16x256xf32> to vector<2x32xf32>
    %26 = arith.addf %24, %25 : vector<2x32xf32>
    %27 = vector.extract_strided_slice %19 {offsets = [8, 128], sizes = [2, 32], strides = [1, 1]} : vector<16x256xf32> to vector<2x32xf32>
    %28 = arith.addf %26, %27 : vector<2x32xf32>
    %29 = vector.extract_strided_slice %19 {offsets = [10, 160], sizes = [2, 32], strides = [1, 1]} : vector<16x256xf32> to vector<2x32xf32>
    %30 = arith.addf %28, %29 : vector<2x32xf32>
    %31 = vector.extract_strided_slice %19 {offsets = [12, 192], sizes = [2, 32], strides = [1, 1]} : vector<16x256xf32> to vector<2x32xf32>
    %32 = arith.addf %30, %31 : vector<2x32xf32>
    %33 = vector.extract_strided_slice %19 {offsets = [14, 224], sizes = [2, 32], strides = [1, 1]} : vector<16x256xf32> to vector<2x32xf32>
    %34 = arith.addf %32, %33 : vector<2x32xf32>
    %35 = vector.extract_strided_slice %15 {offsets = [16, 0], sizes = [16, 32], strides = [1, 1]} : vector<128x32xbf16> to vector<16x32xbf16>
    %c1 = arith.constant 1 : index
    %c0_10 = arith.constant 0 : index
    %c0_11 = arith.constant 0 : index
    %36 = vector.load %arg3[%c1, %c0_10, %c0_11] : memref<8x32x256xbf16, #tpu.memory_space<vmem>>, vector<1x32x256xbf16>
    %37 = vector.shape_cast %36 : vector<1x32x256xbf16> to vector<32x256xbf16>
    %cst_12 = arith.constant dense<0.000000e+00> : vector<16x256xf32>
    %38 = tpu.matmul %35, %37, %cst_12 {dimension_numbers = #tpu.dot_dimension_numbers<[1], [0], [0], [1], [0, 0, 1, 1], [], []>} : vector<16x32xbf16>, vector<32x256xbf16>, vector<16x256xf32> -> vector<16x256xf32>
    %39 = vector.extract_strided_slice %38 {offsets = [0, 0], sizes = [2, 32], strides = [1, 1]} : vector<16x256xf32> to vector<2x32xf32>
    %40 = arith.addf %34, %39 : vector<2x32xf32>
    %41 = vector.extract_strided_slice %38 {offsets = [2, 32], sizes = [2, 32], strides = [1, 1]} : vector<16x256xf32> to vector<2x32xf32>
    %42 = arith.addf %40, %41 : vector<2x32xf32>
    %43 = vector.extract_strided_slice %38 {offsets = [4, 64], sizes = [2, 32], strides = [1, 1]} : vector<16x256xf32> to vector<2x32xf32>
    %44 = arith.addf %42, %43 : vector<2x32xf32>
    %45 = vector.extract_strided_slice %38 {offsets = [6, 96], sizes = [2, 32], strides = [1, 1]} : vector<16x256xf32> to vector<2x32xf32>
    %46 = arith.addf %44, %45 : vector<2x32xf32>
    %47 = vector.extract_strided_slice %38 {offsets = [8, 128], sizes = [2, 32], strides = [1, 1]} : vector<16x256xf32> to vector<2x32xf32>
    %48 = arith.addf %46, %47 : vector<2x32xf32>
    %49 = vector.extract_strided_slice %38 {offsets = [10, 160], sizes = [2, 32], strides = [1, 1]} : vector<16x256xf32> to vector<2x32xf32>
    %50 = arith.addf %48, %49 : vector<2x32xf32>
    %51 = vector.extract_strided_slice %38 {offsets = [12, 192], sizes = [2, 32], strides = [1, 1]} : vector<16x256xf32> to vector<2x32xf32>
    %52 = arith.addf %50, %51 : vector<2x32xf32>
    %53 = vector.extract_strided_slice %38 {offsets = [14, 224], sizes = [2, 32], strides = [1, 1]} : vector<16x256xf32> to vector<2x32xf32>
    %54 = arith.addf %52, %53 : vector<2x32xf32>
    %55 = vector.extract_strided_slice %15 {offsets = [32, 0], sizes = [16, 32], strides = [1, 1]} : vector<128x32xbf16> to vector<16x32xbf16>
    %c2 = arith.constant 2 : index
    %c0_13 = arith.constant 0 : index
    %c0_14 = arith.constant 0 : index
    %56 = vector.load %arg3[%c2, %c0_13, %c0_14] : memref<8x32x256xbf16, #tpu.memory_space<vmem>>, vector<1x32x256xbf16>
    %57 = vector.shape_cast %56 : vector<1x32x256xbf16> to vector<32x256xbf16>
    %cst_15 = arith.constant dense<0.000000e+00> : vector<16x256xf32>
    %58 = tpu.matmul %55, %57, %cst_15 {dimension_numbers = #tpu.dot_dimension_numbers<[1], [0], [0], [1], [0, 0, 1, 1], [], []>} : vector<16x32xbf16>, vector<32x256xbf16>, vector<16x256xf32> -> vector<16x256xf32>
    %59 = vector.extract_strided_slice %58 {offsets = [0, 0], sizes = [2, 32], strides = [1, 1]} : vector<16x256xf32> to vector<2x32xf32>
    %60 = arith.addf %54, %59 : vector<2x32xf32>
    %61 = vector.extract_strided_slice %58 {offsets = [2, 32], sizes = [2, 32], strides = [1, 1]} : vector<16x256xf32> to vector<2x32xf32>
    %62 = arith.addf %60, %61 : vector<2x32xf32>
    %63 = vector.extract_strided_slice %58 {offsets = [4, 64], sizes = [2, 32], strides = [1, 1]} : vector<16x256xf32> to vector<2x32xf32>
    %64 = arith.addf %62, %63 : vector<2x32xf32>
    %65 = vector.extract_strided_slice %58 {offsets = [6, 96], sizes = [2, 32], strides = [1, 1]} : vector<16x256xf32> to vector<2x32xf32>
    %66 = arith.addf %64, %65 : vector<2x32xf32>
    %67 = vector.extract_strided_slice %58 {offsets = [8, 128], sizes = [2, 32], strides = [1, 1]} : vector<16x256xf32> to vector<2x32xf32>
    %68 = arith.addf %66, %67 : vector<2x32xf32>
    %69 = vector.extract_strided_slice %58 {offsets = [10, 160], sizes = [2, 32], strides = [1, 1]} : vector<16x256xf32> to vector<2x32xf32>
    %70 = arith.addf %68, %69 : vector<2x32xf32>
    %71 = vector.extract_strided_slice %58 {offsets = [12, 192], sizes = [2, 32], strides = [1, 1]} : vector<16x256xf32> to vector<2x32xf32>
    %72 = arith.addf %70, %71 : vector<2x32xf32>
    %73 = vector.extract_strided_slice %58 {offsets = [14, 224], sizes = [2, 32], strides = [1, 1]} : vector<16x256xf32> to vector<2x32xf32>
    %74 = arith.addf %72, %73 : vector<2x32xf32>
    %75 = vector.extract_strided_slice %15 {offsets = [48, 0], sizes = [16, 32], strides = [1, 1]} : vector<128x32xbf16> to vector<16x32xbf16>
    %c3 = arith.constant 3 : index
    %c0_16 = arith.constant 0 : index
    %c0_17 = arith.constant 0 : index
    %76 = vector.load %arg3[%c3, %c0_16, %c0_17] : memref<8x32x256xbf16, #tpu.memory_space<vmem>>, vector<1x32x256xbf16>
    %77 = vector.shape_cast %76 : vector<1x32x256xbf16> to vector<32x256xbf16>
    %cst_18 = arith.constant dense<0.000000e+00> : vector<16x256xf32>
    %78 = tpu.matmul %75, %77, %cst_18 {dimension_numbers = #tpu.dot_dimension_numbers<[1], [0], [0], [1], [0, 0, 1, 1], [], []>} : vector<16x32xbf16>, vector<32x256xbf16>, vector<16x256xf32> -> vector<16x256xf32>
    %79 = vector.extract_strided_slice %78 {offsets = [0, 0], sizes = [2, 32], strides = [1, 1]} : vector<16x256xf32> to vector<2x32xf32>
    %80 = arith.addf %74, %79 : vector<2x32xf32>
    %81 = vector.extract_strided_slice %78 {offsets = [2, 32], sizes = [2, 32], strides = [1, 1]} : vector<16x256xf32> to vector<2x32xf32>
    %82 = arith.addf %80, %81 : vector<2x32xf32>
    %83 = vector.extract_strided_slice %78 {offsets = [4, 64], sizes = [2, 32], strides = [1, 1]} : vector<16x256xf32> to vector<2x32xf32>
    %84 = arith.addf %82, %83 : vector<2x32xf32>
    %85 = vector.extract_strided_slice %78 {offsets = [6, 96], sizes = [2, 32], strides = [1, 1]} : vector<16x256xf32> to vector<2x32xf32>
    %86 = arith.addf %84, %85 : vector<2x32xf32>
    %87 = vector.extract_strided_slice %78 {offsets = [8, 128], sizes = [2, 32], strides = [1, 1]} : vector<16x256xf32> to vector<2x32xf32>
    %88 = arith.addf %86, %87 : vector<2x32xf32>
    %89 = vector.extract_strided_slice %78 {offsets = [10, 160], sizes = [2, 32], strides = [1, 1]} : vector<16x256xf32> to vector<2x32xf32>
    %90 = arith.addf %88, %89 : vector<2x32xf32>
    %91 = vector.extract_strided_slice %78 {offsets = [12, 192], sizes = [2, 32], strides = [1, 1]} : vector<16x256xf32> to vector<2x32xf32>
    %92 = arith.addf %90, %91 : vector<2x32xf32>
    %93 = vector.extract_strided_slice %78 {offsets = [14, 224], sizes = [2, 32], strides = [1, 1]} : vector<16x256xf32> to vector<2x32xf32>
    %94 = arith.addf %92, %93 : vector<2x32xf32>
    %95 = vector.extract_strided_slice %15 {offsets = [64, 0], sizes = [16, 32], strides = [1, 1]} : vector<128x32xbf16> to vector<16x32xbf16>
    %c4 = arith.constant 4 : index
    %c0_19 = arith.constant 0 : index
    %c0_20 = arith.constant 0 : index
    %96 = vector.load %arg3[%c4, %c0_19, %c0_20] : memref<8x32x256xbf16, #tpu.memory_space<vmem>>, vector<1x32x256xbf16>
    %97 = vector.shape_cast %96 : vector<1x32x256xbf16> to vector<32x256xbf16>
    %cst_21 = arith.constant dense<0.000000e+00> : vector<16x256xf32>
    %98 = tpu.matmul %95, %97, %cst_21 {dimension_numbers = #tpu.dot_dimension_numbers<[1], [0], [0], [1], [0, 0, 1, 1], [], []>} : vector<16x32xbf16>, vector<32x256xbf16>, vector<16x256xf32> -> vector<16x256xf32>
    %99 = vector.extract_strided_slice %98 {offsets = [0, 0], sizes = [2, 32], strides = [1, 1]} : vector<16x256xf32> to vector<2x32xf32>
    %100 = arith.addf %94, %99 : vector<2x32xf32>
    %101 = vector.extract_strided_slice %98 {offsets = [2, 32], sizes = [2, 32], strides = [1, 1]} : vector<16x256xf32> to vector<2x32xf32>
    %102 = arith.addf %100, %101 : vector<2x32xf32>
    %103 = vector.extract_strided_slice %98 {offsets = [4, 64], sizes = [2, 32], strides = [1, 1]} : vector<16x256xf32> to vector<2x32xf32>
    %104 = arith.addf %102, %103 : vector<2x32xf32>
    %105 = vector.extract_strided_slice %98 {offsets = [6, 96], sizes = [2, 32], strides = [1, 1]} : vector<16x256xf32> to vector<2x32xf32>
    %106 = arith.addf %104, %105 : vector<2x32xf32>
    %107 = vector.extract_strided_slice %98 {offsets = [8, 128], sizes = [2, 32], strides = [1, 1]} : vector<16x256xf32> to vector<2x32xf32>
    %108 = arith.addf %106, %107 : vector<2x32xf32>
    %109 = vector.extract_strided_slice %98 {offsets = [10, 160], sizes = [2, 32], strides = [1, 1]} : vector<16x256xf32> to vector<2x32xf32>
    %110 = arith.addf %108, %109 : vector<2x32xf32>
    %111 = vector.extract_strided_slice %98 {offsets = [12, 192], sizes = [2, 32], strides = [1, 1]} : vector<16x256xf32> to vector<2x32xf32>
    %112 = arith.addf %110, %111 : vector<2x32xf32>
    %113 = vector.extract_strided_slice %98 {offsets = [14, 224], sizes = [2, 32], strides = [1, 1]} : vector<16x256xf32> to vector<2x32xf32>
    %114 = arith.addf %112, %113 : vector<2x32xf32>
    %115 = vector.extract_strided_slice %15 {offsets = [80, 0], sizes = [16, 32], strides = [1, 1]} : vector<128x32xbf16> to vector<16x32xbf16>
    %c5 = arith.constant 5 : index
    %c0_22 = arith.constant 0 : index
    %c0_23 = arith.constant 0 : index
    %116 = vector.load %arg3[%c5, %c0_22, %c0_23] : memref<8x32x256xbf16, #tpu.memory_space<vmem>>, vector<1x32x256xbf16>
    %117 = vector.shape_cast %116 : vector<1x32x256xbf16> to vector<32x256xbf16>
    %cst_24 = arith.constant dense<0.000000e+00> : vector<16x256xf32>
    %118 = tpu.matmul %115, %117, %cst_24 {dimension_numbers = #tpu.dot_dimension_numbers<[1], [0], [0], [1], [0, 0, 1, 1], [], []>} : vector<16x32xbf16>, vector<32x256xbf16>, vector<16x256xf32> -> vector<16x256xf32>
    %119 = vector.extract_strided_slice %118 {offsets = [0, 0], sizes = [2, 32], strides = [1, 1]} : vector<16x256xf32> to vector<2x32xf32>
    %120 = arith.addf %114, %119 : vector<2x32xf32>
    %121 = vector.extract_strided_slice %118 {offsets = [2, 32], sizes = [2, 32], strides = [1, 1]} : vector<16x256xf32> to vector<2x32xf32>
    %122 = arith.addf %120, %121 : vector<2x32xf32>
    %123 = vector.extract_strided_slice %118 {offsets = [4, 64], sizes = [2, 32], strides = [1, 1]} : vector<16x256xf32> to vector<2x32xf32>
    %124 = arith.addf %122, %123 : vector<2x32xf32>
    %125 = vector.extract_strided_slice %118 {offsets = [6, 96], sizes = [2, 32], strides = [1, 1]} : vector<16x256xf32> to vector<2x32xf32>
    %126 = arith.addf %124, %125 : vector<2x32xf32>
    %127 = vector.extract_strided_slice %118 {offsets = [8, 128], sizes = [2, 32], strides = [1, 1]} : vector<16x256xf32> to vector<2x32xf32>
    %128 = arith.addf %126, %127 : vector<2x32xf32>
    %129 = vector.extract_strided_slice %118 {offsets = [10, 160], sizes = [2, 32], strides = [1, 1]} : vector<16x256xf32> to vector<2x32xf32>
    %130 = arith.addf %128, %129 : vector<2x32xf32>
    %131 = vector.extract_strided_slice %118 {offsets = [12, 192], sizes = [2, 32], strides = [1, 1]} : vector<16x256xf32> to vector<2x32xf32>
    %132 = arith.addf %130, %131 : vector<2x32xf32>
    %133 = vector.extract_strided_slice %118 {offsets = [14, 224], sizes = [2, 32], strides = [1, 1]} : vector<16x256xf32> to vector<2x32xf32>
    %134 = arith.addf %132, %133 : vector<2x32xf32>
    %135 = vector.extract_strided_slice %15 {offsets = [96, 0], sizes = [16, 32], strides = [1, 1]} : vector<128x32xbf16> to vector<16x32xbf16>
    %c6 = arith.constant 6 : index
    %c0_25 = arith.constant 0 : index
    %c0_26 = arith.constant 0 : index
    %136 = vector.load %arg3[%c6, %c0_25, %c0_26] : memref<8x32x256xbf16, #tpu.memory_space<vmem>>, vector<1x32x256xbf16>
    %137 = vector.shape_cast %136 : vector<1x32x256xbf16> to vector<32x256xbf16>
    %cst_27 = arith.constant dense<0.000000e+00> : vector<16x256xf32>
    %138 = tpu.matmul %135, %137, %cst_27 {dimension_numbers = #tpu.dot_dimension_numbers<[1], [0], [0], [1], [0, 0, 1, 1], [], []>} : vector<16x32xbf16>, vector<32x256xbf16>, vector<16x256xf32> -> vector<16x256xf32>
    %139 = vector.extract_strided_slice %138 {offsets = [0, 0], sizes = [2, 32], strides = [1, 1]} : vector<16x256xf32> to vector<2x32xf32>
    %140 = arith.addf %134, %139 : vector<2x32xf32>
    %141 = vector.extract_strided_slice %138 {offsets = [2, 32], sizes = [2, 32], strides = [1, 1]} : vector<16x256xf32> to vector<2x32xf32>
    %142 = arith.addf %140, %141 : vector<2x32xf32>
    %143 = vector.extract_strided_slice %138 {offsets = [4, 64], sizes = [2, 32], strides = [1, 1]} : vector<16x256xf32> to vector<2x32xf32>
    %144 = arith.addf %142, %143 : vector<2x32xf32>
    %145 = vector.extract_strided_slice %138 {offsets = [6, 96], sizes = [2, 32], strides = [1, 1]} : vector<16x256xf32> to vector<2x32xf32>
    %146 = arith.addf %144, %145 : vector<2x32xf32>
    %147 = vector.extract_strided_slice %138 {offsets = [8, 128], sizes = [2, 32], strides = [1, 1]} : vector<16x256xf32> to vector<2x32xf32>
    %148 = arith.addf %146, %147 : vector<2x32xf32>
    %149 = vector.extract_strided_slice %138 {offsets = [10, 160], sizes = [2, 32], strides = [1, 1]} : vector<16x256xf32> to vector<2x32xf32>
    %150 = arith.addf %148, %149 : vector<2x32xf32>
    %151 = vector.extract_strided_slice %138 {offsets = [12, 192], sizes = [2, 32], strides = [1, 1]} : vector<16x256xf32> to vector<2x32xf32>
    %152 = arith.addf %150, %151 : vector<2x32xf32>
    %153 = vector.extract_strided_slice %138 {offsets = [14, 224], sizes = [2, 32], strides = [1, 1]} : vector<16x256xf32> to vector<2x32xf32>
    %154 = arith.addf %152, %153 : vector<2x32xf32>
    %155 = vector.extract_strided_slice %15 {offsets = [112, 0], sizes = [16, 32], strides = [1, 1]} : vector<128x32xbf16> to vector<16x32xbf16>
    %c7 = arith.constant 7 : index
    %c0_28 = arith.constant 0 : index
    %c0_29 = arith.constant 0 : index
    %156 = vector.load %arg3[%c7, %c0_28, %c0_29] : memref<8x32x256xbf16, #tpu.memory_space<vmem>>, vector<1x32x256xbf16>
    %157 = vector.shape_cast %156 : vector<1x32x256xbf16> to vector<32x256xbf16>
    %cst_30 = arith.constant dense<0.000000e+00> : vector<16x256xf32>
    %158 = tpu.matmul %155, %157, %cst_30 {dimension_numbers = #tpu.dot_dimension_numbers<[1], [0], [0], [1], [0, 0, 1, 1], [], []>} : vector<16x32xbf16>, vector<32x256xbf16>, vector<16x256xf32> -> vector<16x256xf32>
    %159 = vector.extract_strided_slice %158 {offsets = [0, 0], sizes = [2, 32], strides = [1, 1]} : vector<16x256xf32> to vector<2x32xf32>
    %160 = arith.addf %154, %159 : vector<2x32xf32>
    %161 = vector.extract_strided_slice %158 {offsets = [2, 32], sizes = [2, 32], strides = [1, 1]} : vector<16x256xf32> to vector<2x32xf32>
    %162 = arith.addf %160, %161 : vector<2x32xf32>
    %163 = vector.extract_strided_slice %158 {offsets = [4, 64], sizes = [2, 32], strides = [1, 1]} : vector<16x256xf32> to vector<2x32xf32>
    %164 = arith.addf %162, %163 : vector<2x32xf32>
    %165 = vector.extract_strided_slice %158 {offsets = [6, 96], sizes = [2, 32], strides = [1, 1]} : vector<16x256xf32> to vector<2x32xf32>
    %166 = arith.addf %164, %165 : vector<2x32xf32>
    %167 = vector.extract_strided_slice %158 {offsets = [8, 128], sizes = [2, 32], strides = [1, 1]} : vector<16x256xf32> to vector<2x32xf32>
    %168 = arith.addf %166, %167 : vector<2x32xf32>
    %169 = vector.extract_strided_slice %158 {offsets = [10, 160], sizes = [2, 32], strides = [1, 1]} : vector<16x256xf32> to vector<2x32xf32>
    %170 = arith.addf %168, %169 : vector<2x32xf32>
    %171 = vector.extract_strided_slice %158 {offsets = [12, 192], sizes = [2, 32], strides = [1, 1]} : vector<16x256xf32> to vector<2x32xf32>
    %172 = arith.addf %170, %171 : vector<2x32xf32>
    %173 = vector.extract_strided_slice %158 {offsets = [14, 224], sizes = [2, 32], strides = [1, 1]} : vector<16x256xf32> to vector<2x32xf32>
    %174 = arith.addf %172, %173 : vector<2x32xf32>
    %c0_31 = arith.constant 0 : index
    %c0_32 = arith.constant 0 : index
    %175 = vector.load %arg4[%c0_31, %c0_32] : memref<1x32xf32, #tpu.memory_space<vmem>>, vector<1x32xf32>
    %176 = vector.broadcast %175 : vector<1x32xf32> to vector<2x32xf32>
    %177 = arith.addf %174, %176 : vector<2x32xf32>
    %cst_33 = arith.constant 0.000000e+00 : f32
    %178 = vector.broadcast %cst_33 : f32 to vector<2x32xf32>
    %179 = arith.maximumf %177, %178 : vector<2x32xf32>
    %c0_34 = arith.constant 0 : index
    %c0_35 = arith.constant 0 : index
    %180 = vector.load %arg5[%c0_34, %c0_35] : memref<32x10xf32, #tpu.memory_space<vmem>>, vector<32x10xf32>
    %cst_36 = arith.constant dense<0.000000e+00> : vector<2x10xf32>
    %181 = tpu.matmul %179, %180, %cst_36 {dimension_numbers = #tpu.dot_dimension_numbers<[1], [0], [0], [1], [0, 0, 1, 1], [], []>} : vector<2x32xf32>, vector<32x10xf32>, vector<2x10xf32> -> vector<2x10xf32>
    %c0_37 = arith.constant 0 : index
    %c0_38 = arith.constant 0 : index
    %182 = vector.load %arg6[%c0_37, %c0_38] : memref<1x10xf32, #tpu.memory_space<vmem>>, vector<1x10xf32>
    %183 = vector.broadcast %182 : vector<1x10xf32> to vector<2x10xf32>
    %184 = arith.addf %181, %183 : vector<2x10xf32>
    %c0_39 = arith.constant 0 : index
    %c0_40 = arith.constant 0 : index
    %185 = vector.load %arg7[%c0_39, %c0_40] : memref<2x10xf32, #tpu.memory_space<vmem>>, vector<2x10xf32>
    tpu.vector_store %arg7[%c0_39, %c0_40], %184 {strides = array<i32>} : memref<2x10xf32, #tpu.memory_space<vmem>>, vector<2x10xf32>,
    return
  }
}

</mosaic_0001>

<bundles_post_ra>
// kernel: cifar_forward.1
= control target key start
LH: loop header
LB: loop body
LE: loop exit
PB: predicated region body
PF: predicated region fallthrough
CT: control target
= control target key end

     0   :  { %s2687_s0 = inlined_call_operand.vmem [shape: bf16[512,128], index: 0, kind: input, shape index: {}]   ;;  %s2688_s1 = inlined_call_operand.vmem [shape: bf16[128,32], index: 1, kind: input, shape index: {}]   ;;  %s2689_s2 = inlined_call_operand.vmem [shape: f32[1,32], index: 2, kind: input, shape index: {}]   ;;  %s2690_s3 = inlined_call_operand.vmem [shape: bf16[8,32,256], index: 3, kind: input, shape index: {}]   ;;  %s2691_s4 = inlined_call_operand.vmem [shape: f32[1,32], index: 4, kind: input, shape index: {}]   ;;  %s2692_s5 = inlined_call_operand.vmem [shape: f32[32,10], index: 5, kind: input, shape index: {}]   ;;  %s2693_s6 = inlined_call_operand.vmem [shape: f32[1,10], index: 6, kind: input, shape index: {}]   ;;  %s2694_s7 = inlined_call_operand.hbm [shape: f32[2,10], index: 7, kind: output, shape index: {}]  }
   0x1   :  { %v1967_v0 = vld [vmem:[%s2688_s1 + $0x38] sm:$0xff]   ;;  %v1968_v1 = vld [vmem:[%s2688_s1 + $0x30] sm:$0xff]   ;;  %v1969_v2 = vld [vmem:[%s2688_s1 + $0x28] sm:$0xff]  }
   0x2   :  { %1853 = vmatprep.subr.bf16.mxu0 %v1967_v0  ;;  %1944 = vmatprep.subr.bf16.mxu1 %v1967_v0  ;;  %v1970_v3 = vld [vmem:[%s2688_s1 + $0x20] sm:$0xff]   ;;  %v1971_v5 = vld [vmem:[%s2688_s1 + $0x18] sm:$0xff]   ;;  %v1972_v6 = vld [vmem:[%s2688_s1 + $0x10] sm:$0xff]  }
   0x3   :  { %1854 = vmatpush3.bf16.msra.mxu0 %v1967_v0  ;;  %1952 = vmatpush3.bf16.msra.mxu1 %v1967_v0  ;;  %v1975_v4 = vld [vmem:[%s2687_s0] sm:$0xff]   ;;  %v1973_v7 = vld [vmem:[%s2688_s1 + $0x8] sm:$0xff]   ;;  %v1994_v9 = vld [vmem:[%s2687_s0 + $0xd0] sm:$0xff]  }
   0x4   :  { %1855 = vmatprep.subr.bf16.mxu0 %v1968_v1  ;;  %1945 = vmatprep.subr.bf16.mxu1 %v1968_v1  ;;  %v1974_v8 = vld [vmem:[%s2688_s1] sm:$0xff]   ;;  %v1976_v10 = vld [vmem:[%s2687_s0 + $0x8] sm:$0xff]   ;;  %v1977_v11 = vld [vmem:[%s2687_s0 + $0x10] sm:$0xff]  }
   0x5   :  { %1869 = vmatprep.mubr.bf16.mxu0 %v1975_v4  ;;  %1921 = vmatprep.mubr.bf16.mxu1 %v1994_v9  ;;  %v1996_v12 = vld [vmem:[%s2687_s0 + $0xd8] sm:$0xff]   ;;  %v1998_v13 = vld [vmem:[%s2687_s0 + $0xe0] sm:$0xff]   ;;  %v2000_v16 = vld [vmem:[%s2687_s0 + $0xe8] sm:$0xff]  }
   0x6   :  { %v1978_v14 = vld [vmem:[%s2687_s0 + $0x18] sm:$0xff]   ;;  %v1979_v15 = vld [vmem:[%s2687_s0 + $0x20] sm:$0xff]   ;;  %v2002_v17 = vld [vmem:[%s2687_s0 + $0xf0] sm:$0xff]  }
   0x7   :  { %1856 = vmatpush3.bf16.msra.mxu0 %v1968_v1  ;;  %1953 = vmatpush3.bf16.msra.mxu1 %v1968_v1  ;;  %v1980_v18 = vld [vmem:[%s2687_s0 + $0x28] sm:$0xff]   ;;  %v2004_v19 = vld [vmem:[%s2687_s0 + $0xf8] sm:$0xff]   ;;  %v1981_v20 = vld [vmem:[%s2687_s0 + $0x30] sm:$0xff]  }
   0x8   :  { %1857 = vmatprep.subr.bf16.mxu0 %v1969_v2  ;;  %1946 = vmatprep.subr.bf16.mxu1 %v1969_v2 }
   0xb   :  { %1858 = vmatpush3.bf16.msra.mxu0 %v1969_v2  ;;  %1954 = vmatpush3.bf16.msra.mxu1 %v1969_v2 }
   0xc   :  { %1859 = vmatprep.subr.bf16.mxu0 %v1970_v3  ;;  %1947 = vmatprep.subr.bf16.mxu1 %v1970_v3 }
   0xf   :  { %1860 = vmatpush3.bf16.msra.mxu0 %v1970_v3  ;;  %1955 = vmatpush3.bf16.msra.mxu1 %v1970_v3 }
  0x10   :  { %1861 = vmatprep.subr.bf16.mxu0 %v1971_v5  ;;  %1948 = vmatprep.subr.bf16.mxu1 %v1971_v5 }
  0x13   :  { %1862 = vmatpush3.bf16.msra.mxu0 %v1971_v5  ;;  %1956 = vmatpush3.bf16.msra.mxu1 %v1971_v5 }
  0x14   :  { %1863 = vmatprep.subr.bf16.mxu0 %v1972_v6  ;;  %1949 = vmatprep.subr.bf16.mxu1 %v1972_v6 }
  0x17   :  { %1864 = vmatpush3.bf16.msra.mxu0 %v1972_v6  ;;  %1957 = vmatpush3.bf16.msra.mxu1 %v1972_v6 }
  0x18   :  { %1865 = vmatprep.subr.bf16.mxu0 %v1973_v7  ;;  %1950 = vmatprep.subr.bf16.mxu1 %v1973_v7 }
  0x1b   :  { %1866 = vmatpush3.bf16.msra.mxu0 %v1973_v7  ;;  %1958 = vmatpush3.bf16.msra.mxu1 %v1973_v7 }
  0x1c   :  { %1867 = vmatprep.subr.bf16.mxu0 %v1974_v8  ;;  %1951 = vmatprep.subr.bf16.mxu1 %v1974_v8 }
  0x1f   :  { %1868 = vmatpush3.bf16.msra.mxu0 %v1974_v8  ;;  %1959 = vmatpush3.bf16.msra.mxu1 %v1974_v8 }
  0x22   :  { %1870 = vmatmul.mubr.bf16.vlgmr.msra.gmra.mxu0 %v1976_v10  ;;  %1922 = vmatmul.mubr.bf16.vlgmr.msra.gmra.mxu1 %v1996_v12 }
  0x23   :  { %1873 = vmatprep.mubr.bf16.mxu0 %v1977_v11  ;;  %1925 = vmatprep.mubr.bf16.mxu1 %v1998_v13 }
  0x2a   :  { %1874 = vmatmul.mubr.bf16.gmra.mxu0 %v1978_v14  ;;  %1926 = vmatmul.mubr.bf16.gmra.mxu1 %v2000_v16 }
  0x2b   :  { %1877 = vmatprep.mubr.bf16.mxu0 %v1979_v15  ;;  %1929 = vmatprep.mubr.bf16.mxu1 %v2002_v17 }
  0x32   :  { %1878 = vmatmul.mubr.bf16.gmra.mxu0 %v1980_v18  ;;  %1930 = vmatmul.mubr.bf16.gmra.mxu1 %v2004_v19 }
  0x33   :  { %12 = vsyncpa [#allocation3], 0  ;;  %1881 = vmatprep.mubr.bf16.mxu0 %v1981_v20  ;;  %v1982_v21 = vld [vmem:[%s2687_s0 + $0x38] sm:$0xff]   ;;  %v1983_v22 = vld [vmem:[%s2687_s0 + $0x40] sm:$0xff]   ;;  %v2077_v44 = vmov 0   ;;  %vm788_vm0 = vcmask 261120  }
  0x34   :  { %v1984_v23 = vld [vmem:[%s2687_s0 + $0x48] sm:$0xff]   ;;  %v1985_v24 = vld [vmem:[%s2687_s0 + $0x50] sm:$0xff]   ;;  %v1986_v25 = vld [vmem:[%s2687_s0 + $0x58] sm:$0xff]   ;;  %824 = vmatprep.mubr.bf16.mxu1 %v2077_v44  ;;  %s2078_s21 = smov 32   ;;  %s2079_s22 = smov 96   ;;  %vm2082_vm1 = vmmov 0  }
  0x35   :  { %v1987_v26 = vld [vmem:[%s2687_s0 + $0x60] sm:$0xff]   ;;  %v1988_v27 = vld [vmem:[%s2687_s0 + $0x68] sm:$0xff]   ;;  %v1989_v28 = vld [vmem:[%s2687_s0 + $0x70] sm:$0xff]   ;;  %s2083_s10 = smov [#allocation2]   ;;  %vm1680_vm2 = vcmask 74752  }
  0x36   :  { %v1990_v29 = vld [vmem:[%s2687_s0 + $0x78] sm:$0xff]   ;;  %v1991_v30 = vld [vmem:[%s2687_s0 + $0x80] sm:$0xff]   ;;  %v1992_v31 = vld [vmem:[%s2687_s0 + $0x88] sm:$0xff]   ;;  %s1688_s11 = sshll.u32 %s2083_s10, 4  ;;  %s1689_s11 = int_to_ptr.vmem [resolvable:$true] %s1688_s11 }
  0x37   :  { %v1993_v32 = vld [vmem:[%s2687_s0 + $0x90] sm:$0xff]   ;;  %v1995_v33 = vld [vmem:[%s2687_s0 + $0x98] sm:$0xff]   ;;  %v1997_v34 = vld [vmem:[%s2687_s0 + $0xa0] sm:$0xff]   ;;  %s2055_s12 = scalar_lea.vmem %s1689_s11, 32  ;;  %p2060_p1 = scmp.lt.s32.totalorder %s1689_s11, %s1689_s11 }
  0x38   :  { %v1999_v35 = vld [vmem:[%s2687_s0 + $0xa8] sm:$0xff]   ;;  %v2001_v36 = vld [vmem:[%s2687_s0 + $0xb0] sm:$0xff]   ;;  %v2003_v37 = vld [vmem:[%s2687_s0 + $0xb8] sm:$0xff]   ;;  %p2056_p0 = scmp.ne.s32.totalorder %s1689_s11, %s2055_s12  ;;  %p2061_p2 = scmp.lt.s32.totalorder %s2055_s12, %s2055_s12 }
  0x39   :  { %v2005_v38 = vld [vmem:[%s2687_s0 + $0xc0] sm:$0xff]   ;;  %v2006_v39 = vld [vmem:[%s2687_s0 + $0xc8] sm:$0xff]   ;;  %v2007_v40 = vld [vmem:[%s2690_s3 + $0x10] ss:$8 sps:$4 sm:$0xff]  }
  0x3a   :  { %1882 = vmatmul.mubr.bf16.gmra.mxu0 %v1982_v21  ;;  %v2009_v41 = vld [vmem:[%s2690_s3 + $0x14] ss:$8 sps:$4 sm:$0xff]   ;;  %v2012_v42 = vld [vmem:[%s2690_s3 + $0x4] ss:$8 sps:$4 sm:$0xff]   ;;  %v2010_v43 = vld [vmem:[%s2690_s3] ss:$8 sps:$4 sm:$0xff]   ;;  %p2062_p3 = por %p2061_p2, %p2060_p1 }
  0x3b   :  { %1885 = vmatprep.mubr.bf16.mxu0 %v1983_v22  ;;  %804 = vmatprep.subr.bf16.mxu1 %v2009_v41  ;;  %v2015_v45 = vld [vmem:[%s2690_s3 + $0x34] ss:$8 sps:$4 sm:$0xff]   ;;  %v2269_v60 = vld [vmem:[%s2689_s2] ss:$0 sm:$0xff] }
  0x3c   :  { %805 = vmatpush1.bf16.msra.mxu1 %v2007_v40  ;;  %p2063_p4 = pnand %p2062_p3, %p2056_p0 }
  0x3d   :  { %806 = vmatprep.subr.bf16.mxu1 %v2012_v42 }
  0x40   :  { %807 = vmatpush1.bf16.msra.mxu1 %v2010_v43 }
  0x41   :  { %906 = vmatprep.subr.bf16.mxu1 %v2015_v45 }
  0x42   :  { %1886 = vmatmul.mubr.bf16.gmra.mxu0 %v1984_v23 }
  0x43   :  { %1889 = vmatprep.mubr.bf16.mxu0 %v1985_v24 }
  0x4a   :  { %1890 = vmatmul.mubr.bf16.gmra.mxu0 %v1986_v25 }
  0x4b   :  { %1893 = vmatprep.mubr.bf16.mxu0 %v1987_v26 }
  0x52   :  { %1894 = vmatmul.mubr.bf16.gmra.mxu0 %v1988_v27 }
  0x53   :  { %1897 = vmatprep.mubr.bf16.mxu0 %v1989_v28 }
  0x5a   :  { %1898 = vmatmul.mubr.bf16.gmra.mxu0 %v1990_v29 }
  0x5b   :  { %1901 = vmatprep.mubr.bf16.mxu0 %v1991_v30 }
  0x62   :  { %1902 = vmatmul.mubr.bf16.gmra.mxu0 %v1992_v31 }
  0x63   :  { %1905 = vmatprep.mubr.bf16.mxu0 %v1993_v32 }
  0x6a   :  { %1906 = vmatmul.mubr.bf16.gmra.mxu0 %v1995_v33 }
  0x6b   :  { %1909 = vmatprep.mubr.bf16.mxu0 %v1997_v34 }
  0x72   :  { %1910 = vmatmul.mubr.bf16.gmra.mxu0 %v1999_v35 }
  0x73   :  { %1913 = vmatprep.mubr.bf16.mxu0 %v2001_v36 }
  0x7a   :  { %1914 = vmatmul.mubr.bf16.gmra.mxu0 %v2003_v37 }
  0x7b   :  { %1917 = vmatprep.mubr.bf16.mxu0 %v2005_v38 }
  0x82   :  { %1918 = vmatmul.mubr.bf16.gmra.mxu0 %v2006_v39 }
  0xe2   :  { %v1871_v46 = vpop.f32.mrf.mxu0  ;;  %v2300_v38 = vpop.f32.mrf.mxu1 }
  0xe3   :  { %v398_v63 = vadd.f32 %v1871_v46, %v2269_v60 }
  0xe4   :  { %v389_v47 = vpop.f32.mrf.mxu0 }
  0xe5   :  { %v390_v0 = vadd.f32 %v2269_v60, %v389_v47  ;;  %v646_v4 = vmax.f32 %v398_v63, 0.0 }
  0xe6   :  { %v1872_v48 = vpop.f32.mrf.mxu0 }
  0xe7   :  { %v401_v5 = vadd.f32 %v1872_v48, %v2269_v60  ;;  %v644_v8 = vmax.f32 %v390_v0, 0.0 }
  0xe8   :  { %v392_v49 = vpop.f32.mrf.mxu0 }
  0xe9   :  { %v393_v10 = vadd.f32 %v2269_v60, %v392_v49  ;;  %v647_v16 = vmax.f32 %v401_v5, 0.0 }
  0xea   :  { %v1875_v50 = vpop.f32.mrf.mxu0 }
  0xeb   :  { %v414_v14 = vadd.f32 %v1875_v50, %v2269_v60  ;;  %v645_v22 = vmax.f32 %v393_v10, 0.0 }
  0xec   :  { %v405_v51 = vpop.f32.mrf.mxu0 }
  0xed   :  { %v406_v20 = vadd.f32 %v2269_v60, %v405_v51  ;;  %v650_v26 = vmax.f32 %v414_v14, 0.0 }
  0xee   :  { %v1876_v52 = vpop.f32.mrf.mxu0 }
  0xef   :  { %v417_v28 = vadd.f32 %v1876_v52, %v2269_v60  ;;  %v648_v32 = vmax.f32 %v406_v20, 0.0  ;;  %v597_v52 = vpop.f32.mrf.mxu1 }
  0xf0   :  { %v408_v53 = vpop.f32.mrf.mxu0 }
  0xf1   :  { %v409_v34 = vadd.f32 %v2269_v60, %v408_v53  ;;  %v651_v41 = vmax.f32 %v417_v28, 0.0 }
  0xf2   :  { %v1879_v54 = vpop.f32.mrf.mxu0 }
  0xf3   :  { %v430_v39 = vadd.f32 %v1879_v54, %v2269_v60  ;;  %v649_v48 = vmax.f32 %v409_v34, 0.0 }
  0xf4   :  { %v421_v55 = vpop.f32.mrf.mxu0 }
  0xf5   :  { %v422_v46 = vadd.f32 %v2269_v60, %v421_v55  ;;  %v654_v53 = vmax.f32 %v430_v39, 0.0 }
  0xf6   :  { %v1880_v56 = vpop.f32.mrf.mxu0 }
  0xf7   :  { %v433_v54 = vadd.f32 %v1880_v56, %v2269_v60 }
  0xf8   :  { %v2260_v57 = vpop.f32.mrf.mxu0 }
  0xf9   :  { %v425_v55 = vadd.f32 %v2269_v60, %v2260_v57  ;;  %v655_v10 = vmax.f32 %v433_v54, 0.0 }
  0xfa   :  { %v2262_v58 = vpop.f32.mrf.mxu0 }
  0xfc   :  { %v2264_v59 = vpop.f32.mrf.mxu0 }
  0xfe   :  { %v2271_v61 = vpop.f32.mrf.mxu0 }
 0x100   :  { %v2273_v62 = vpop.f32.mrf.mxu0 }
 0x102   :  { %v1887_v1 = vpop.f32.mrf.mxu0 }
 0x103   :  { %v462_v2 = vadd.f32 %v1887_v1, %v2269_v60 }
 0x104   :  { %v453_v3 = vpop.f32.mrf.mxu0 }
 0x105   :  { %v662_v6 = vmax.f32 %v462_v2, 0.0  ;;  %v454_v7 = vadd.f32 %v2269_v60, %v453_v3  ;;  %v652_v3 = vmax.f32 %v422_v46, 0.0 }
 0x106   :  { %v1888_v9 = vpop.f32.mrf.mxu0 }
 0x107   :  { %v2281_v11 = vmax.f32 %v646_v4, %v662_v6  ;;  %v660_v12 = vmax.f32 %v454_v7, 0.0  ;;  %v465_v13 = vadd.f32 %v1888_v9, %v2269_v60  ;;  %v446_v9 = vadd.f32 %v2262_v58, %v2269_v60 }
 0x108   :  { %v456_v15 = vpop.f32.mrf.mxu0 }
 0x109   :  { %v2285_v17 = vmax.f32 %v644_v8, %v660_v12  ;;  %v663_v18 = vmax.f32 %v465_v13, 0.0  ;;  %v457_v19 = vadd.f32 %v2269_v60, %v456_v15  ;;  %v1924_v8 = vpop.f32.mrf.mxu1  ;;  %v438_v15 = vadd.f32 %v2269_v60, %v2264_v59 }
 0x10a   :  { %v1891_v21 = vpop.f32.mrf.mxu0 }
 0x10b   :  { %v2289_v23 = vmax.f32 %v647_v16, %v663_v18  ;;  %v661_v24 = vmax.f32 %v457_v19, 0.0  ;;  %v478_v25 = vadd.f32 %v1891_v21, %v2269_v60  ;;  %v653_v16 = vmax.f32 %v425_v55, 0.0  ;;  %v600_v21 = vpop.f32.mrf.mxu1 }
 0x10c   :  { %v469_v27 = vpop.f32.mrf.mxu0  ;;  %v656_v28 = vmax.f32 %v438_v15, 0.0 }
 0x10d   :  { %v2293_v29 = vmax.f32 %v645_v22, %v661_v24  ;;  %v666_v30 = vmax.f32 %v478_v25, 0.0  ;;  %v470_v31 = vadd.f32 %v2269_v60, %v469_v27  ;;  %v658_v22 = vmax.f32 %v446_v9, 0.0  ;;  %v1927_v34 = vpop.f32.mrf.mxu1 }
 0x10e   :  { %v1892_v33 = vpop.f32.mrf.mxu0  ;;  %v449_v24 = vadd.f32 %v2271_v61, %v2269_v60 }
 0x10f   :  { %v2297_v35 = vmax.f32 %v650_v26, %v666_v30  ;;  %v664_v36 = vmax.f32 %v470_v31, 0.0  ;;  %v481_v37 = vadd.f32 %v1892_v33, %v2269_v60  ;;  %v441_v30 = vadd.f32 %v2269_v60, %v2273_v62  ;;  %v613_v62 = vpop.f32.mrf.mxu1 }
 0x110   :  { %v472_v40 = vpop.f32.mrf.mxu0 }
 0x111   :  { %v2303_v42 = vmax.f32 %v648_v32, %v664_v36  ;;  %v667_v43 = vmax.f32 %v481_v37, 0.0  ;;  %v473_v45 = vadd.f32 %v2269_v60, %v472_v40  ;;  %v659_v37 = vmax.f32 %v449_v24, 0.0 }
 0x112   :  { %v1895_v47 = vpop.f32.mrf.mxu0  ;;  %v614_v24 = vadd.f32 %v2269_v60, %v613_v62 }
 0x113   :  { %v2307_v49 = vmax.f32 %v651_v41, %v667_v43  ;;  %v665_v50 = vmax.f32 %v473_v45, 0.0  ;;  %v494_v51 = vadd.f32 %v1895_v47, %v2269_v60  ;;  %v657_v43 = vmax.f32 %v441_v30, 0.0 }
 0x114   :  { %v485_v63 = vpop.f32.mrf.mxu0 }
 0x115   :  { %v2311_v0 = vmax.f32 %v649_v48, %v665_v50  ;;  %v670_v1 = vmax.f32 %v494_v51, 0.0  ;;  %v486_v2 = vadd.f32 %v2269_v60, %v485_v63  ;;  %v1928_v51 = vpop.f32.mrf.mxu1  ;;  %v606_v63 = vadd.f32 %v2300_v38, %v2269_v60 }
 0x116   :  { %v1896_v4 = vpop.f32.mrf.mxu0 }
 0x117   :  { %v2316_v5 = vmax.f32 %v654_v53, %v670_v1  ;;  %v668_v6 = vmax.f32 %v486_v2, 0.0  ;;  %v497_v7 = vadd.f32 %v1896_v4, %v2269_v60  ;;  %v598_v2 = vadd.f32 %v2269_v60, %v597_v52  ;;  %v616_v4 = vpop.f32.mrf.mxu1 }
 0x118   :  { %v488_v56 = vpop.f32.mrf.mxu0 }
 0x119   :  { %v2321_v12 = vmax.f32 %v652_v3, %v668_v6  ;;  %v671_v13 = vmax.f32 %v497_v7, 0.0  ;;  %v489_v14 = vadd.f32 %v2269_v60, %v488_v56  ;;  %v609_v3 = vadd.f32 %v1924_v8, %v2269_v60 }
 0x11a   :  { %v1899_v57 = vpop.f32.mrf.mxu0  ;;  %v698_v7 = vmax.f32 %v606_v63, 0.0  ;;  %v601_v56 = vadd.f32 %v2269_v60, %v600_v21 }
 0x11b   :  { %v2326_v18 = vmax.f32 %v655_v10, %v671_v13  ;;  %v669_v19 = vmax.f32 %v489_v14, 0.0  ;;  %v510_v20 = vadd.f32 %v1899_v57, %v2269_v60  ;;  %v696_v14 = vmax.f32 %v598_v2, 0.0  ;;  %v1931_v57 = vpop.f32.mrf.mxu1 }
 0x11c   :  { %v501_v58 = vpop.f32.mrf.mxu0  ;;  %v699_v15 = vmax.f32 %v609_v3, 0.0  ;;  %v638_v63 = vadd.f32 %v1931_v57, %v2269_v60 }
 0x11d   :  { %v2331_v25 = vmax.f32 %v653_v16, %v669_v19  ;;  %v674_v26 = vmax.f32 %v510_v20, 0.0  ;;  %v502_v27 = vadd.f32 %v2269_v60, %v501_v58  ;;  %v697_v20 = vmax.f32 %v601_v56, 0.0 }
 0x11e   :  { %v1900_v59 = vpop.f32.mrf.mxu0  ;;  %v622_v58 = vadd.f32 %v1927_v34, %v2269_v60 }
 0x11f   :  { %v2336_v31 = vmax.f32 %v658_v22, %v674_v26  ;;  %v672_v32 = vmax.f32 %v502_v27, 0.0  ;;  %v513_v33 = vadd.f32 %v1900_v59, %v2269_v60  ;;  %v629_v59 = vpop.f32.mrf.mxu1 }
 0x120   :  { %v504_v36 = vpop.f32.mrf.mxu0 }
 0x121   :  { %v2339_v39 = vmax.f32 %v656_v28, %v672_v32  ;;  %v675_v61 = vmax.f32 %v513_v33, 0.0  ;;  %v505_v40 = vadd.f32 %v2269_v60, %v504_v36  ;;  %v625_v32 = vadd.f32 %v1928_v51, %v2269_v60  ;;  %v1932_v3 = vpop.f32.mrf.mxu1 }
 0x122   :  { %v2342_v41 = vpop.f32.mrf.mxu0  ;;  %v617_v33 = vadd.f32 %v2269_v60, %v616_v4 }
 0x123   :  { %v2344_v45 = vmax.f32 %v659_v37, %v675_v61  ;;  %v673_v46 = vmax.f32 %v505_v40, 0.0 }
 0x124   :  { %v2346_v47 = vpop.f32.mrf.mxu0 }
 0x125   :  { %v2348_v48 = vmax.f32 %v657_v43, %v673_v46  ;;  %v702_v43 = vmax.f32 %v622_v58, 0.0  ;;  %v700_v46 = vmax.f32 %v614_v24, 0.0 }
 0x126   :  { %v2350_v50 = vpop.f32.mrf.mxu0 }
 0x128   :  { %v2352_v53 = vpop.f32.mrf.mxu0 }
 0x12a   :  { %v1907_v54 = vpop.f32.mrf.mxu0 }
 0x12b   :  { %v542_v1 = vadd.f32 %v1907_v54, %v2269_v60 }
 0x12c   :  { %v533_v55 = vpop.f32.mrf.mxu0 }
 0x12d   :  { %v682_v6 = vmax.f32 %v542_v1, 0.0  ;;  %v534_v9 = vadd.f32 %v2269_v60, %v533_v55 }
 0x12e   :  { %v1908_v10 = vpop.f32.mrf.mxu0 }
 0x12f   :  { %v680_v13 = vmax.f32 %v534_v9, 0.0  ;;  %v545_v38 = vadd.f32 %v1908_v10, %v2269_v60  ;;  %v730_v19 = vmax.f32 %v682_v6, %v698_v7  ;;  %v701_v7 = vmax.f32 %v617_v33, 0.0 }
 0x130   :  { %v536_v16 = vpop.f32.mrf.mxu0 }
 0x131   :  { %v683_v52 = vmax.f32 %v545_v38, 0.0  ;;  %v537_v8 = vadd.f32 %v2269_v60, %v536_v16  ;;  %v728_v26 = vmax.f32 %v680_v13, %v696_v14  ;;  %v746_v36 = vmax.f32 %v2297_v35, %v730_v19 }
 0x132   :  { %v1911_v22 = vpop.f32.mrf.mxu0  ;;  %v706_v38 = vmax.f32 %v638_v63, 0.0  ;;  %v630_v19 = vadd.f32 %v2269_v60, %v629_v59 }
 0x133   :  { %v731_v21 = vmax.f32 %v683_v52, %v699_v15  ;;  %v681_v27 = vmax.f32 %v537_v8, 0.0  ;;  %v558_v28 = vadd.f32 %v1911_v22, %v2269_v60  ;;  %v744_v54 = vmax.f32 %v2303_v42, %v728_v26  ;;  %v632_v15 = vpop.f32.mrf.mxu1 }
 0x134   :  { %v549_v30 = vpop.f32.mrf.mxu0  ;;  %v641_v42 = vadd.f32 %v1932_v3, %v2269_v60 }
 0x135   :  { %v747_v37 = vmax.f32 %v2307_v49, %v731_v21  ;;  %v729_v61 = vmax.f32 %v681_v27, %v697_v20  ;;  %v550_v34 = vadd.f32 %v2269_v60, %v549_v30  ;;  %v686_v40 = vmax.f32 %v558_v28, 0.0 }
 0x136   :  { %v1912_v62 = vpop.f32.mrf.mxu0  ;;  %v703_v49 = vmax.f32 %v625_v32, 0.0  ;;  %v707_v26 = vmax.f32 %v641_v42, 0.0  ;;  %v633_v21 = vadd.f32 %v2269_v60, %v632_v15 }
 0x137   :  { %v2373_v1 = vpack.c.bf16 %v747_v37, %v746_v36  ;;  %v745_v51 = vmax.f32 %v2311_v0, %v729_v61  ;;  %v684_v2 = vmax.f32 %v550_v34, 0.0  ;;  %v561_v35 = vadd.f32 %v1912_v62, %v2269_v60 }
 0x138   :  { %v552_v4 = vpop.f32.mrf.mxu0  ;;  %v734_v9 = vmax.f32 %v686_v40, %v702_v43  ;;  %v704_v36 = vmax.f32 %v630_v19, 0.0  ;;  %v526_v34 = vadd.f32 %v2342_v41, %v2269_v60  ;;  %v705_v40 = vmax.f32 %v633_v21, 0.0  ;;  %v2025_v21 = vld [vmem:[%s2690_s3 + $0x70] ss:$8 sps:$4 sm:$0xff]  }
 0x139   :  { %v2377_v55 = vpack.c.bf16 %v745_v51, %v744_v54  ;;  %v553_v6 = vadd.f32 %v2269_v60, %v552_v4  ;;  %v687_v56 = vmax.f32 %v561_v35, 0.0  ;;  %v732_v13 = vmax.f32 %v684_v2, %v700_v46 }
 0x13a   :  { %v1915_v10 = vpop.f32.mrf.mxu0  ;;  %v750_v22 = vmax.f32 %v2316_v5, %v734_v9  ;;  %v518_v62 = vadd.f32 %v2269_v60, %v2346_v47  ;;  %v678_v35 = vmax.f32 %v526_v34, 0.0  ;;  %v2043_v34 = vld [vmem:[%s2690_s3 + $0xd0] ss:$8 sps:$4 sm:$0xff]  }
 0x13b   :  { %v685_v14 = vmax.f32 %v553_v6, 0.0  ;;  %v574_v0 = vadd.f32 %v1915_v10, %v2269_v60  ;;  %v735_v57 = vmax.f32 %v687_v56, %v703_v49  ;;  %v748_v27 = vmax.f32 %v2321_v12, %v732_v13 }
 0x13c   :  { %v565_v16 = vpop.f32.mrf.mxu0  ;;  %v521_v6 = vadd.f32 %v2269_v60, %v2352_v53  ;;  %v676_v56 = vmax.f32 %v518_v62, 0.0 }
 0x13d   :  { %v733_v52 = vmax.f32 %v685_v14, %v701_v7  ;;  %v690_v8 = vmax.f32 %v574_v0, 0.0  ;;  %v566_v20 = vadd.f32 %v2269_v60, %v565_v16  ;;  %v751_v58 = vmax.f32 %v2326_v18, %v735_v57 }
 0x13e   :  { %v1916_v24 = vpop.f32.mrf.mxu0  ;;  %v677_v15 = vmax.f32 %v521_v6, 0.0 }
 0x13f   :  { %v749_v28 = vmax.f32 %v2331_v25, %v733_v52  ;;  %v738_v30 = vmax.f32 %v690_v8, %v706_v38  ;;  %v577_v32 = vadd.f32 %v1916_v24, %v2269_v60  ;;  %v2390_v59 = vpack.c.bf16 %v751_v58, %v750_v22  ;;  %v2018_v58 = vld [vmem:[%s2690_s3 + $0x24] ss:$8 sps:$4 sm:$0xff]   ;;  %v2022_v24 = vld [vmem:[%s2690_s3 + $0x40] ss:$8 sps:$4 sm:$0xff]  }
 0x140   :  { %v688_v33 = vmax.f32 %v566_v20, 0.0  ;;  %v568_v37 = vpop.f32.mrf.mxu0 }
 0x141   :  { %v2392_v61 = vpack.c.bf16 %v749_v28, %v748_v27  ;;  %v754_v5 = vmax.f32 %v2336_v31, %v738_v30  ;;  %v691_v18 = vmax.f32 %v577_v32, 0.0  ;;  %v569_v12 = vadd.f32 %v2269_v60, %v568_v37  ;;  %v2030_v27 = vld [vmem:[%s2690_s3 + $0x64] ss:$8 sps:$4 sm:$0xff]   ;;  %v2028_v28 = vld [vmem:[%s2690_s3 + $0x60] ss:$8 sps:$4 sm:$0xff]  }
 0x142   :  { %v1919_v25 = vpop.f32.mrf.mxu0  ;;  %v736_v63 = vmax.f32 %v688_v33, %v704_v36  ;;  %v529_v31 = vadd.f32 %v2350_v50, %v2269_v60  ;;  %v2033_v30 = vld [vmem:[%s2690_s3 + $0x94] ss:$8 sps:$4 sm:$0xff]   ;;  %v2031_v32 = vld [vmem:[%s2690_s3 + $0x90] ss:$8 sps:$4 sm:$0xff]   ;;  %v2034_v33 = vld [vmem:[%s2690_s3 + $0x80] ss:$8 sps:$4 sm:$0xff]  }
 0x143   :  { %v739_v43 = vmax.f32 %v691_v18, %v707_v26  ;;  %v590_v46 = vadd.f32 %v1919_v25, %v2269_v60  ;;  %v689_v54 = vmax.f32 %v569_v12, 0.0  ;;  %v2027_v26 = vld [vmem:[%s2690_s3 + $0x74] ss:$8 sps:$4 sm:$0xff]   ;;  %v2037_v37 = vld [vmem:[%s2690_s3 + $0xb0] ss:$8 sps:$4 sm:$0xff]  }
 0x144   :  { %v581_v51 = vpop.f32.mrf.mxu0  ;;  %v752_v10 = vmax.f32 %v2339_v39, %v736_v63  ;;  %v679_v42 = vmax.f32 %v529_v31, 0.0  ;;  %v2039_v36 = vld [vmem:[%s2690_s3 + $0xb4] ss:$8 sps:$4 sm:$0xff]   ;;  %v2046_v12 = vld [vmem:[%s2690_s3 + $0xc0] ss:$8 sps:$4 sm:$0xff]  }
 0x145   :  { %v755_v2 = vmax.f32 %v2344_v45, %v739_v43  ;;  %v694_v3 = vmax.f32 %v590_v46, 0.0  ;;  %v582_v41 = vadd.f32 %v2269_v60, %v581_v51  ;;  %v737_v49 = vmax.f32 %v689_v54, %v705_v40  ;;  %v2045_v18 = vld [vmem:[%s2690_s3 + $0xd4] ss:$8 sps:$4 sm:$0xff]   ;;  %v2049_v25 = vld [vmem:[%s2690_s3 + $0xf0] ss:$8 sps:$4 sm:$0xff]  }
 0x146   :  { %v1920_v4 = vpop.f32.mrf.mxu0  ;;  %v2051_v40 = vld [vmem:[%s2690_s3 + $0xf4] ss:$8 sps:$4 sm:$0xff]   ;;  %v2052_v43 = vld [vmem:[%s2690_s3 + $0xe0] ss:$8 sps:$4 sm:$0xff]  }
 0x147   :  { %v2407_v7 = vpack.c.bf16 %v755_v2, %v754_v5  ;;  %v692_v47 = vmax.f32 %v582_v41, 0.0  ;;  %v593_v9 = vadd.f32 %v1920_v4, %v2269_v60  ;;  %v753_v50 = vmax.f32 %v2348_v48, %v737_v49  ;;  %v2040_v5 = vld [vmem:[%s2690_s3 + $0xa0] ss:$8 sps:$4 sm:$0xff]  }
 0x148   :  { %v584_v45 = vpop.f32.mrf.mxu0  ;;  %v726_v13 = vmax.f32 %v678_v35, %v694_v3 }
 0x149   :  { %v695_v14 = vmax.f32 %v593_v9, 0.0  ;;  %v585_v0 = vadd.f32 %v2269_v60, %v584_v45  ;;  %v2413_v38 = vpack.c.bf16 %v753_v50, %v752_v10  ;;  %v724_v53 = vmax.f32 %v676_v56, %v692_v47  ;;  %v2013_v60 = vld [vmem:[%s2690_s3 + $0x30] ss:$8 sps:$4 sm:$0xff]  }
 0x14a   :  { %v742_v19 = vmax.f32 %v2281_v11, %v726_v13  ;;  %v2016_v11 = vld [vmem:[%s2690_s3 + $0x20] ss:$8 sps:$4 sm:$0xff]  }
 0x14b   :  { %v727_v57 = vmax.f32 %v679_v42, %v695_v14  ;;  %v693_v16 = vmax.f32 %v585_v0, 0.0  ;;  %v740_v39 = vmax.f32 %v2285_v17, %v724_v53  ;;  %v2021_v17 = vld [vmem:[%s2690_s3 + $0x54] ss:$8 sps:$4 sm:$0xff]  }
 0x14d   :  { %v743_v52 = vmax.f32 %v2289_v23, %v727_v57  ;;  %v725_v8 = vmax.f32 %v677_v15, %v693_v16  ;;  %v2019_v23 = vld [vmem:[%s2690_s3 + $0x50] ss:$8 sps:$4 sm:$0xff]  }
 0x14f   :  { %v757_v48 = vpack.c.bf16 %v743_v52, %v742_v19  ;;  %v741_v20 = vmax.f32 %v2293_v29, %v725_v8  ;;  %v2024_v29 = vld [vmem:[%s2690_s3 + $0x44] ss:$8 sps:$4 sm:$0xff]  }
 0x151   :  { %v756_v22 = vpack.c.bf16 %v741_v20, %v740_v39 }
 0x153   :  { %1741 = vmatmul.mubr.msk.bf16.vlgmr.msra.gmra.mxu1 %vm788_vm0, %v756_v22 }
 0x154   :  { %907 = vmatpush1.bf16.msra.mxu1 %v2013_v60  ;;  %926 = vmatprep.mubr.bf16.mxu1 %v2077_v44 }
 0x155   :  { %908 = vmatprep.subr.bf16.mxu1 %v2018_v58 }
 0x158   :  { %909 = vmatpush1.bf16.msra.mxu1 %v2016_v11 }
 0x159   :  { %1009 = vmatprep.subr.bf16.mxu1 %v2021_v17 }
 0x15b   :  { %1750 = vmatmul.mubr.msk.bf16.vlgmr.msra.gmra.mxu1 %vm788_vm0, %v757_v48 }
 0x15c   :  { %1010 = vmatpush1.bf16.msra.mxu1 %v2019_v23  ;;  %1029 = vmatprep.mubr.bf16.mxu1 %v2077_v44 }
 0x15d   :  { %1011 = vmatprep.subr.bf16.mxu1 %v2024_v29 }
 0x160   :  { %1012 = vmatpush1.bf16.msra.mxu1 %v2022_v24 }
 0x161   :  { %1112 = vmatprep.subr.bf16.mxu1 %v2027_v26 }
 0x163   :  { %1759 = vmatmul.mubr.msk.bf16.vlgmr.msra.gmra.mxu1 %vm788_vm0, %v2377_v55  ;;  %v2036_v55 = vld [vmem:[%s2690_s3 + $0x84] ss:$8 sps:$4 sm:$0xff]  }
 0x164   :  { %1113 = vmatpush1.bf16.msra.mxu1 %v2025_v21  ;;  %1132 = vmatprep.mubr.bf16.mxu1 %v2077_v44 }
 0x165   :  { %1114 = vmatprep.subr.bf16.mxu1 %v2030_v27 }
 0x168   :  { %1115 = vmatpush1.bf16.msra.mxu1 %v2028_v28 }
 0x169   :  { %1215 = vmatprep.subr.bf16.mxu1 %v2033_v30 }
 0x16b   :  { %1768 = vmatmul.mubr.msk.bf16.vlgmr.msra.gmra.mxu1 %vm788_vm0, %v2373_v1  ;;  %v2042_v1 = vld [vmem:[%s2690_s3 + $0xa4] ss:$8 sps:$4 sm:$0xff]  }
 0x16c   :  { %1216 = vmatpush1.bf16.msra.mxu1 %v2031_v32  ;;  %1235 = vmatprep.mubr.bf16.mxu1 %v2077_v44 }
 0x16d   :  { %1217 = vmatprep.subr.bf16.mxu1 %v2036_v55 }
 0x170   :  { %1218 = vmatpush1.bf16.msra.mxu1 %v2034_v33 }
 0x171   :  { %1318 = vmatprep.subr.bf16.mxu1 %v2039_v36 }
 0x173   :  { %1777 = vmatmul.mubr.msk.bf16.vlgmr.msra.gmra.mxu1 %vm788_vm0, %v2392_v61  ;;  %v2048_v61 = vld [vmem:[%s2690_s3 + $0xc4] ss:$8 sps:$4 sm:$0xff]  }
 0x174   :  { %1319 = vmatpush1.bf16.msra.mxu1 %v2037_v37  ;;  %1338 = vmatprep.mubr.bf16.mxu1 %v2077_v44 }
 0x175   :  { %1320 = vmatprep.subr.bf16.mxu1 %v2042_v1 }
 0x178   :  { %1321 = vmatpush1.bf16.msra.mxu1 %v2040_v5 }
 0x179   :  { %1421 = vmatprep.subr.bf16.mxu1 %v2045_v18 }
 0x17b   :  { %1786 = vmatmul.mubr.msk.bf16.vlgmr.msra.gmra.mxu1 %vm788_vm0, %v2390_v59  ;;  %v2054_v59 = vld [vmem:[%s2690_s3 + $0xe4] ss:$8 sps:$4 sm:$0xff]   ;;  %s2080_s3 = smov 64  }
 0x17c   :  { %1422 = vmatpush1.bf16.msra.mxu1 %v2043_v34  ;;  %1441 = vmatprep.mubr.bf16.mxu1 %v2077_v44 }
 0x17d   :  { %1423 = vmatprep.subr.bf16.mxu1 %v2048_v61 }
 0x180   :  { %1424 = vmatpush1.bf16.msra.mxu1 %v2046_v12 }
 0x181   :  { %1524 = vmatprep.subr.bf16.mxu1 %v2051_v40 }
 0x183   :  { %1795 = vmatmul.mubr.msk.bf16.vlgmr.msra.gmra.mxu1 %vm788_vm0, %v2413_v38 }
 0x184   :  { %1525 = vmatpush1.bf16.msra.mxu1 %v2049_v25  ;;  %1544 = vmatprep.mubr.bf16.mxu1 %v2077_v44 }
 0x185   :  { %1526 = vmatprep.subr.bf16.mxu1 %v2054_v59 }
 0x188   :  { %1527 = vmatpush1.bf16.msra.mxu1 %v2052_v43 }
 0x18b   :  { %1804 = vmatmul.mubr.msk.bf16.vlgmr.msra.gmra.mxu1 %vm788_vm0, %v2407_v7 }
 0x213   :  { %v2521_v46 = vpop.f32.mrf.mxu1 }
 0x214   :  { %v844_v62 = vrot.slane %v2521_v46, 6  ;;  %v834_v63 = vrot.slane %v2521_v46, 2  ;;  %v839_v44 = vrot.slane %v2521_v46, 4 }
 0x215   :  { %v828_v54 = vpop.f32.mrf.mxu1 }
 0x216   :  { %845 = vrot.lane.b32.xlu1 %v844_v62, %s2078_s21  ;;  %835 = vrot.lane.b32.xlu0 %v834_v63, %s2079_s22 }
 0x217   :  { %v829_v51 = vpop.f32.mrf.mxu1 }
 0x219   :  { %v2528_v31 = vpop.f32.mrf.mxu1 }
 0x21a   :  { %840 = vrot.lane.b32.xlu0 %v839_v44, %s2080_s3  ;;  %v851_v2 = vrot.slane %v2528_v31, 2  ;;  %v856_v41 = vrot.slane %v2528_v31, 4  ;;  %v861_v49 = vrot.slane %v2528_v31, 6 }
 0x21b   :  { %v2532_v3 = vpop.f32.mrf.mxu1 }
 0x21c   :  { %852 = vrot.lane.b32.xlu1 %v851_v2, %s2079_s22  ;;  %v937_v6 = vrot.slane %v2532_v3, 2  ;;  %v942_v47 = vrot.slane %v2532_v3, 4  ;;  %v947_v56 = vrot.slane %v2532_v3, 6 }
 0x21d   :  { %v930_v35 = vpop.f32.mrf.mxu1 }
 0x21e   :  { %857 = vrot.lane.b32.xlu0 %v856_v41, %s2080_s3 }
 0x21f   :  { %v931_v4 = vpop.f32.mrf.mxu1 }
 0x220   :  { %862 = vrot.lane.b32.xlu1 %v861_v49, %s2078_s21 }
 0x221   :  { %v2540_v7 = vpop.f32.mrf.mxu1 }
 0x222   :  { %938 = vrot.lane.b32.xlu0 %v937_v6, %s2079_s22  ;;  %v954_v50 = vrot.slane %v2540_v7, 2  ;;  %v959_v42 = vrot.slane %v2540_v7, 4  ;;  %v964_v14 = vrot.slane %v2540_v7, 6 }
 0x223   :  { %v2544_v9 = vpop.f32.mrf.mxu1 }
 0x224   :  { %943 = vrot.lane.b32.xlu1 %v942_v47, %s2080_s3  ;;  %v1040_v38 = vrot.slane %v2544_v9, 2  ;;  %v1045_v53 = vrot.slane %v2544_v9, 4  ;;  %v1050_v16 = vrot.slane %v2544_v9, 6 }
 0x225   :  { %v1033_v10 = vpop.f32.mrf.mxu1 }
 0x226   :  { %948 = vrot.lane.b32.xlu0 %v947_v56, %s2078_s21 }
 0x227   :  { %v1034_v45 = vpop.f32.mrf.mxu1 }
 0x228   :  { %955 = vrot.lane.b32.xlu1 %v954_v50, %s2079_s22 }
 0x229   :  { %v2552_v13 = vpop.f32.mrf.mxu1 }
 0x22a   :  { %960 = vrot.lane.b32.xlu0 %v959_v42, %s2080_s3  ;;  %v1057_v52 = vrot.slane %v2552_v13, 2  ;;  %v1062_v39 = vrot.slane %v2552_v13, 4  ;;  %v1067_v20 = vrot.slane %v2552_v13, 6  ;;  %v2081_v42 = vmov 0.0  }
 0x22b   :  { %v2556_v0 = vpop.f32.mrf.mxu1  ;;  %1933 = vmatprep.subr.mxu1 %v2081_v42  ;;  %1941 = vmatprep.mubr.msk.f32.mxu1 %vm2082_vm1, %v2081_v42 }
 0x22c   :  { %965 = vrot.lane.b32.xlu1 %v964_v14, %s2078_s21  ;;  %v1143_v22 = vrot.slane %v2556_v0, 2  ;;  %v1148_v11 = vrot.slane %v2556_v0, 4  ;;  %v1153_v23 = vrot.slane %v2556_v0, 6  ;;  %v1599_v14 = vld [vmem:[%s2692_s5 + $0x18] sm:$0xff] }
 0x22d   :  { %v1136_v15 = vpop.f32.mrf.mxu1  ;;  %1934 = vmatpush3.msra.mxu1 %v1599_v14 }
 0x22e   :  { %1041 = vrot.lane.b32.xlu0 %v1040_v38, %s2079_s22  ;;  %1935 = vmatprep.subr.mxu1 %v2081_v42  ;;  %v1598_v15 = vld [vmem:[%s2692_s5 + $0x10] sm:$0xff] }
 0x22f   :  { %v1137_v57 = vpop.f32.mrf.mxu1  ;;  %1936 = vmatpush3.msra.mxu1 %v1598_v15 }
 0x230   :  { %1046 = vrot.lane.b32.xlu1 %v1045_v53, %s2080_s3  ;;  %1937 = vmatprep.subr.mxu1 %v2081_v42  ;;  %v1597_v57 = vld [vmem:[%s2692_s5 + $0x8] sm:$0xff] }
 0x231   :  { %v2564_v19 = vpop.f32.mrf.mxu1  ;;  %1938 = vmatpush3.msra.mxu1 %v1597_v57 }
 0x232   :  { %1051 = vrot.lane.b32.xlu0 %v1050_v16, %s2078_s21  ;;  %v1160_v24 = vrot.slane %v2564_v19, 2  ;;  %v1165_v21 = vrot.slane %v2564_v19, 4  ;;  %v1170_v28 = vrot.slane %v2564_v19, 6  ;;  %1939 = vmatprep.subr.mxu1 %v2081_v42 }
 0x233   :  { %v2568_v8 = vpop.f32.mrf.mxu1 }
 0x234   :  { %1058 = vrot.lane.b32.xlu1 %v1057_v52, %s2079_s22  ;;  %v1246_v32 = vrot.slane %v2568_v8, 2  ;;  %v1251_v33 = vrot.slane %v2568_v8, 4  ;;  %v1256_v37 = vrot.slane %v2568_v8, 6  ;;  %v1596_v52 = vld [vmem:[%s2692_s5] sm:$0xff] }
 0x235   :  { %v1239_v48 = vpop.f32.mrf.mxu1  ;;  %1940 = vmatpush3.msra.mxu1 %v1596_v52 }
 0x236   :  { %1063 = vrot.lane.b32.xlu0 %v1062_v39, %s2080_s3 }
 0x237   :  { %v1240_v60 = vpop.f32.mrf.mxu1 }
 0x238   :  { %1068 = vrot.lane.b32.xlu1 %v1067_v20, %s2078_s21 }
 0x239   :  { %v2576_v58 = vpop.f32.mrf.mxu1 }
 0x23a   :  { %1144 = vrot.lane.b32.xlu0 %v1143_v22, %s2079_s22  ;;  %v1263_v5 = vrot.slane %v2576_v58, 2  ;;  %v1268_v34 = vrot.slane %v2576_v58, 4  ;;  %v1273_v12 = vrot.slane %v2576_v58, 6 }
 0x23b   :  { %v2580_v17 = vpop.f32.mrf.mxu1 }
 0x23c   :  { %1149 = vrot.lane.b32.xlu1 %v1148_v11, %s2080_s3  ;;  %v1349_v25 = vrot.slane %v2580_v17, 2  ;;  %v1354_v59 = vrot.slane %v2580_v17, 4  ;;  %v1359_v43 = vrot.slane %v2580_v17, 6 }
 0x23d   :  { %v1342_v29 = vpop.f32.mrf.mxu1 }
 0x23e   :  { %1154 = vrot.lane.b32.xlu0 %v1153_v23, %s2078_s21 }
 0x23f   :  { %v1343_v26 = vpop.f32.mrf.mxu1 }
 0x240   :  { %1161 = vrot.lane.b32.xlu1 %v1160_v24, %s2079_s22 }
 0x241   :  { %v2588_v27 = vpop.f32.mrf.mxu1 }
 0x242   :  { %1166 = vrot.lane.b32.xlu0 %v1165_v21, %s2080_s3  ;;  %v1366_v62 = vrot.slane %v2588_v27, 2  ;;  %v1371_v63 = vrot.slane %v2588_v27, 4  ;;  %v1376_v54 = vrot.slane %v2588_v27, 6 }
 0x243   :  { %v2592_v30 = vpop.f32.mrf.mxu1 }
 0x244   :  { %1171 = vrot.lane.b32.xlu1 %v1170_v28, %s2078_s21  ;;  %v1452_v51 = vrot.slane %v2592_v30, 2  ;;  %v1457_v44 = vrot.slane %v2592_v30, 4  ;;  %v1462_v2 = vrot.slane %v2592_v30, 6 }
 0x245   :  { %v1445_v55 = vpop.f32.mrf.mxu1 }
 0x246   :  { %1247 = vrot.lane.b32.xlu0 %v1246_v32, %s2079_s22 }
 0x247   :  { %v1446_v36 = vpop.f32.mrf.mxu1 }
 0x248   :  { %1252 = vrot.lane.b32.xlu1 %v1251_v33, %s2080_s3 }
 0x249   :  { %v2600_v1 = vpop.f32.mrf.mxu1 }
 0x24a   :  { %1257 = vrot.lane.b32.xlu0 %v1256_v37, %s2078_s21  ;;  %v1469_v41 = vrot.slane %v2600_v1, 2  ;;  %v1474_v35 = vrot.slane %v2600_v1, 4  ;;  %v1479_v49 = vrot.slane %v2600_v1, 6 }
 0x24b   :  { %v2604_v18 = vpop.f32.mrf.mxu1 }
 0x24c   :  { %1264 = vrot.lane.b32.xlu1 %v1263_v5, %s2079_s22  ;;  %v1555_v4 = vrot.slane %v2604_v18, 2  ;;  %v1560_v6 = vrot.slane %v2604_v18, 4  ;;  %v1565_v56 = vrot.slane %v2604_v18, 6 }
 0x24d   :  { %v1548_v61 = vpop.f32.mrf.mxu1 }
 0x24e   :  { %1269 = vrot.lane.b32.xlu0 %v1268_v34, %s2080_s3 }
 0x24f   :  { %v1549_v40 = vpop.f32.mrf.mxu1 }
 0x250   :  { %1274 = vrot.lane.b32.xlu1 %v1273_v12, %s2078_s21 }
 0x251   :  { %v2638_v47 = vpop.f32.mrf.mxu1 }
 0x252   :  { %1350 = vrot.lane.b32.xlu0 %v1349_v25, %s2079_s22  ;;  %v1572_v10 = vrot.slane %v2638_v47, 2  ;;  %v1577_v50 = vrot.slane %v2638_v47, 4  ;;  %v1582_v45 = vrot.slane %v2638_v47, 6 }
 0x254   :  { %1355 = vrot.lane.b32.xlu1 %v1354_v59, %s2080_s3 }
 0x256   :  { %1360 = vrot.lane.b32.xlu0 %v1359_v43, %s2078_s21 }
 0x258   :  { %1367 = vrot.lane.b32.xlu1 %v1366_v62, %s2079_s22 }
 0x25a   :  { %1372 = vrot.lane.b32.xlu0 %v1371_v63, %s2080_s3 }
 0x25c   :  { %1377 = vrot.lane.b32.xlu1 %v1376_v54, %s2078_s21 }
 0x25e   :  { %1453 = vrot.lane.b32.xlu0 %v1452_v51, %s2079_s22 }
 0x260   :  { %1458 = vrot.lane.b32.xlu1 %v1457_v44, %s2080_s3 }
 0x262   :  { %1463 = vrot.lane.b32.xlu0 %v1462_v2, %s2078_s21 }
 0x264   :  { %1470 = vrot.lane.b32.xlu1 %v1469_v41, %s2079_s22 }
 0x266   :  { %1475 = vrot.lane.b32.xlu0 %v1474_v35, %s2080_s3 }
 0x268   :  { %1480 = vrot.lane.b32.xlu1 %v1479_v49, %s2078_s21 }
 0x26a   :  { %1556 = vrot.lane.b32.xlu0 %v1555_v4, %s2079_s22 }
 0x26c   :  { %1561 = vrot.lane.b32.xlu1 %v1560_v6, %s2080_s3 }
 0x26e   :  { %1566 = vrot.lane.b32.xlu0 %v1565_v56, %s2078_s21 }
 0x270   :  { %1573 = vrot.lane.b32.xlu1 %v1572_v10, %s2079_s22 }
 0x272   :  { %1578 = vrot.lane.b32.xlu0 %v1577_v50, %s2080_s3 }
 0x274   :  { %1583 = vrot.lane.b32.xlu1 %v1582_v45, %s2078_s21 }
 0x288   :  { %v836_v38 = vpop.permute.xlu0 %835  ;;  %v846_v53 = vpop.permute.xlu1 %845 }
 0x289   :  { %v838_v16 = vadd.f32 %v836_v38, %v2521_v46 }
 0x28c   :  { %v841_v39 = vpop.permute.xlu0 %840 }
 0x28d   :  { %v843_v48 = vadd.f32 %v841_v39, %v838_v16 }
 0x28e   :  { %v853_v20 = vpop.permute.xlu1 %852 }
 0x28f   :  { %v848_v60 = vadd.f32 %v846_v53, %v843_v48 }
 0x290   :  { %v858_v22 = vpop.permute.xlu0 %857 }
 0x291   :  { %v849_v11 = vadd.f32 %v848_v60, %v2528_v31 }
 0x292   :  { %v863_v23 = vpop.permute.xlu1 %862 }
 0x293   :  { %v855_v29 = vadd.f32 %v853_v20, %v849_v11 }
 0x294   :  { %v939_v24 = vpop.permute.xlu0 %938 }
 0x295   :  { %v860_v46 = vadd.f32 %v858_v22, %v855_v29 }
 0x296   :  { %v944_v26 = vpop.permute.xlu1 %943 }
 0x297   :  { %v865_v21 = vadd.f32 %v863_v23, %v860_v46 }
 0x298   :  { %v949_v28 = vpop.permute.xlu0 %948 }
 0x299   :  { %v935_v32 = vadd.f32 %v2532_v3, %v865_v21 }
 0x29a   :  { %v956_v55 = vpop.permute.xlu1 %955 }
 0x29b   :  { %v941_v33 = vadd.f32 %v939_v24, %v935_v32 }
 0x29c   :  { %v961_v36 = vpop.permute.xlu0 %960 }
 0x29d   :  { %v946_v37 = vadd.f32 %v944_v26, %v941_v33 }
 0x29e   :  { %v966_v5 = vpop.permute.xlu1 %965 }
 0x29f   :  { %v951_v34 = vadd.f32 %v949_v28, %v946_v37 }
 0x2a0   :  { %v1042_v61 = vpop.permute.xlu0 %1041 }
 0x2a1   :  { %v952_v12 = vadd.f32 %v951_v34, %v2540_v7 }
 0x2a2   :  { %v1047_v40 = vpop.permute.xlu1 %1046 }
 0x2a3   :  { %v958_v31 = vadd.f32 %v956_v55, %v952_v12 }
 0x2a4   :  { %v1052_v25 = vpop.permute.xlu0 %1051 }
 0x2a5   :  { %v963_v59 = vadd.f32 %v961_v36, %v958_v31 }
 0x2a6   :  { %v1059_v43 = vpop.permute.xlu1 %1058 }
 0x2a7   :  { %v968_v62 = vadd.f32 %v966_v5, %v963_v59 }
 0x2a8   :  { %v1064_v54 = vpop.permute.xlu0 %1063 }
 0x2a9   :  { %v1038_v63 = vadd.f32 %v2544_v9, %v968_v62 }
 0x2aa   :  { %v1069_v3 = vpop.permute.xlu1 %1068 }
 0x2ab   :  { %v1044_v51 = vadd.f32 %v1042_v61, %v1038_v63 }
 0x2ac   :  { %v1145_v41 = vpop.permute.xlu0 %1144 }
 0x2ad   :  { %v1049_v44 = vadd.f32 %v1047_v40, %v1044_v51 }
 0x2ae   :  { %v1150_v49 = vpop.permute.xlu1 %1149 }
 0x2af   :  { %v1054_v2 = vadd.f32 %v1052_v25, %v1049_v44 }
 0x2b0   :  { %v1155_v7 = vpop.permute.xlu0 %1154 }
 0x2b1   :  { %v1055_v35 = vadd.f32 %v1054_v2, %v2552_v13 }
 0x2b2   :  { %v1162_v10 = vpop.permute.xlu1 %1161 }
 0x2b3   :  { %v1061_v4 = vadd.f32 %v1059_v43, %v1055_v35 }
 0x2b4   :  { %v1167_v42 = vpop.permute.xlu0 %1166 }
 0x2b5   :  { %v1066_v6 = vadd.f32 %v1064_v54, %v1061_v4 }
 0x2b6   :  { %v1172_v9 = vpop.permute.xlu1 %1171 }
 0x2b7   :  { %v1071_v56 = vadd.f32 %v1069_v3, %v1066_v6 }
 0x2b8   :  { %v1248_v53 = vpop.permute.xlu0 %1247 }
 0x2b9   :  { %v1141_v50 = vadd.f32 %v2556_v0, %v1071_v56 }
 0x2ba   :  { %v1253_v16 = vpop.permute.xlu1 %1252 }
 0x2bb   :  { %v1147_v45 = vadd.f32 %v1145_v41, %v1141_v50 }
 0x2bc   :  { %v1258_v39 = vpop.permute.xlu0 %1257 }
 0x2bd   :  { %v1152_v14 = vadd.f32 %v1150_v49, %v1147_v45 }
 0x2be   :  { %v1265_v20 = vpop.permute.xlu1 %1264 }
 0x2bf   :  { %v1157_v38 = vadd.f32 %v1155_v7, %v1152_v14 }
 0x2c0   :  { %v1270_v11 = vpop.permute.xlu0 %1269 }
 0x2c1   :  { %v1158_v15 = vadd.f32 %v1157_v38, %v2564_v19 }
 0x2c2   :  { %v1275_v23 = vpop.permute.xlu1 %1274 }
 0x2c3   :  { %v1164_v57 = vadd.f32 %v1162_v10, %v1158_v15 }
 0x2c4   :  { %v1351_v46 = vpop.permute.xlu0 %1350 }
 0x2c5   :  { %v1169_v52 = vadd.f32 %v1167_v42, %v1164_v57 }
 0x2c6   :  { %v1356_v19 = vpop.permute.xlu1 %1355 }
 0x2c7   :  { %v1174_v13 = vadd.f32 %v1172_v9, %v1169_v52 }
 0x2c8   :  { %v1361_v32 = vpop.permute.xlu0 %1360 }
 0x2c9   :  { %v1244_v48 = vadd.f32 %v2568_v8, %v1174_v13 }
 0x2ca   :  { %v1368_v33 = vpop.permute.xlu1 %1367 }
 0x2cb   :  { %v1250_v60 = vadd.f32 %v1248_v53, %v1244_v48 }
 0x2cc   :  { %v1373_v37 = vpop.permute.xlu0 %1372 }
 0x2cd   :  { %v1255_v22 = vadd.f32 %v1253_v16, %v1250_v60 }
 0x2ce   :  { %v1378_v34 = vpop.permute.xlu1 %1377 }
 0x2cf   :  { %v1260_v0 = vadd.f32 %v1258_v39, %v1255_v22 }
 0x2d0   :  { %v1454_v40 = vpop.permute.xlu0 %1453 }
 0x2d1   :  { %v1261_v29 = vadd.f32 %v1260_v0, %v2576_v58 }
 0x2d2   :  { %v1459_v31 = vpop.permute.xlu1 %1458 }
 0x2d3   :  { %v1267_v24 = vadd.f32 %v1265_v20, %v1261_v29 }
 0x2d4   :  { %v1464_v43 = vpop.permute.xlu0 %1463 }
 0x2d5   :  { %v1272_v26 = vadd.f32 %v1270_v11, %v1267_v24 }
 0x2d7   :  { %v1277_v21 = vadd.f32 %v1275_v23, %v1272_v26 }
 0x2d8   :  { %v1476_v51 = vpop.permute.xlu0 %1475 }
 0x2d9   :  { %v1347_v28 = vadd.f32 %v2580_v17, %v1277_v21  ;;  %v1471_v17 = vpop.permute.xlu1 %1470 }
 0x2db   :  { %v1353_v55 = vadd.f32 %v1351_v46, %v1347_v28 }
 0x2dc   :  { %v1557_v41 = vpop.permute.xlu0 %1556 }
 0x2dd   :  { %v1358_v36 = vadd.f32 %v1356_v19, %v1353_v55  ;;  %v1481_v44 = vpop.permute.xlu1 %1480 }
 0x2df   :  { %v1363_v8 = vadd.f32 %v1361_v32, %v1358_v36 }
 0x2e0   :  { %v1567_v7 = vpop.permute.xlu0 %1566 }
 0x2e1   :  { %v1364_v5 = vadd.f32 %v1363_v8, %v2588_v27  ;;  %v1562_v49 = vpop.permute.xlu1 %1561 }
 0x2e3   :  { %v1370_v61 = vadd.f32 %v1368_v33, %v1364_v5 }
 0x2e4   :  { %v1579_v45 = vpop.permute.xlu0 %1578 }
 0x2e5   :  { %v1375_v12 = vadd.f32 %v1373_v37, %v1370_v61  ;;  %v1574_v56 = vpop.permute.xlu1 %1573 }
 0x2e7   :  { %v1380_v58 = vadd.f32 %v1378_v34, %v1375_v12 }
 0x2e9   :  { %v1450_v25 = vadd.f32 %v2592_v30, %v1380_v58  ;;  %v1584_v14 = vpop.permute.xlu1 %1583 }
 0x2eb   :  { %v1456_v59 = vadd.f32 %v1454_v40, %v1450_v25 }
 0x2ed   :  { %v1461_v62 = vadd.f32 %v1459_v31, %v1456_v59 }
 0x2ef   :  { %v1466_v63 = vadd.f32 %v1464_v43, %v1461_v62 }
 0x2f1   :  { %v1467_v54 = vadd.f32 %v1466_v63, %v2600_v1  ;;  %v1805_v1 = vld [vmem:[%s2691_s4] ss:$0 sm:$0xff] }
 0x2f3   :  { %v1473_v3 = vadd.f32 %v1471_v17, %v1467_v54 }
 0x2f5   :  { %v1478_v2 = vadd.f32 %v1476_v51, %v1473_v3 }
 0x2f7   :  { %v1483_v27 = vadd.f32 %v1481_v44, %v1478_v2 }
 0x2f9   :  { %v1553_v35 = vadd.f32 %v2604_v18, %v1483_v27  ;;  %v1806_v18 = vld [vmem:[%s2693_s6] ss:$0 sm:$0xff] }
 0x2fb   :  { %v1559_v4 = vadd.f32 %v1557_v41, %v1553_v35 }
 0x2fd   :  { %v1564_v6 = vadd.f32 %v1562_v49, %v1559_v4 }
 0x2ff   :  { %v1569_v30 = vadd.f32 %v1567_v7, %v1564_v6 }
 0x301   :  { %v1570_v10 = vadd.f32 %v1569_v30, %v2638_v47 }
 0x303   :  { %v1576_v50 = vadd.f32 %v1574_v56, %v1570_v10 }
 0x305   :  { %v1581_v42 = vadd.f32 %v1579_v45, %v1576_v50 }
 0x307   :  { %v1586_v9 = vadd.f32 %v1584_v14, %v1581_v42 }
 0x309   :  { %v1594_v38 = vadd.f32 %v1805_v1, %v1586_v9 }
 0x30b   :  { %v1595_v15 = vmax.f32 %v1594_v38, 0.0 }
 0x30d   :  { %1942 = vmatmul.mubr.msk.f32.vlgmr.msra.gmra.mxu1 %vm788_vm0, %v1595_v15 }
 0x3cd   :  { %v1676_v47 = vpop.f32.mrf.mxu1 }
 0x3ce   :  { %v1677_v53 = vadd.f32 %v1806_v18, %v1676_v47 }
 0x3cf   :  { %v1943_v57 = vpop.f32.mrf.mxu1 }
 0x3d0   :  { %1681 = vst.msk [vmem:[#allocation2] sm:$0x3] %vm1680_vm2, %v1677_v53 }
 0x3d1   :  { %2066 = shalt.err (!%p2063_p4)
}
 0x3d2   :  { %1691 = dma.vmem_to_hbm [thread:$0]  %s1689_s11, 32, %s2694_s7, [#allocation3]  }
 0x3d3   :  { %2075 = dma.done.wait [#allocation3], 32  }
 0x3d4   :  { %2076 = vsyncadd [#allocation3], 4294967264 }
 0x3d5   :  { %1695 = vsyncpa [#allocation3], 1 }

</bundles_post_ra>
